<compile_context>
chip_gen: v5e
topology: v5e:2x2
jax: 0.10.0
libtpu: 0.0.40
codegen_flags: <defaults>
</compile_context>

<pallas_src>
import functools

import jax
import jax.numpy as jnp
import numpy as np
from jax.experimental import pallas as pl
from jax.experimental.pallas import tpu as pltpu

EPS = 1e-6


def _round_up(v, m):
    return (v + m - 1) // m * m


def bicffn_kernel(x_ref, ln_w_ref, ln_b_ref, wi_ref, bi_ref, cw_ref, cb_ref,
                  w1_ref, b1_ref, w2_ref, b2_ref, wo_ref, bo_ref, o_ref,
                  *, seq_len, tile_s, ks, win):
    si = pl.program_id(1)

    xw = x_ref[0, 0].astype(jnp.float32)                       # (win, isize)

    # ---- pre-norm LayerNorm; var = E[x^2] - E[x]^2 (reductions overlap) ----
    mu = jnp.mean(xw, axis=-1, keepdims=True)
    var = jnp.maximum(jnp.mean(xw * xw, axis=-1, keepdims=True) - mu * mu, 0.0)
    xn = (xw - mu) * jax.lax.rsqrt(var + EPS) * ln_w_ref[...] + ln_b_ref[...]

    # ---- transi: Linear(isize -> ahsize), bf16 operands, f32 accumulation --
    mm_dt = wi_ref.dtype
    out_w = jnp.dot(xn.astype(mm_dt), wi_ref[...],
                    preferred_element_type=jnp.float32) + bi_ref[...]  # (win, AH)

    # Rows whose global sequence index is outside [0, S) are the AvgPool1d
    # zero padding (plus host-side tail padding): zero them so the pooling
    # sums below need no boundary masks at all.
    wrow = jax.lax.broadcasted_iota(jnp.int32, (win, 1), 0)
    grow = si * tile_s - (ks + 1) + wrow
    out_w = jnp.where((grow >= 0) & (grow < seq_len), out_w, 0.0)

    # ---- left/right context averages via log-depth prefix sum -------------
    #   lbow[j] = mean(out[j-ks .. j-1]),  rbow[j] = mean(out[j+1 .. j+ks])
    # Window row of central row j is j + ks + 1, so with inclusive cumsum c:
    #   lsum[j] = c[j+ks]     - c[j]
    #   rsum[j] = c[j+2ks+1]  - c[j+ks+1]
    c = out_w
    sh = 1
    while sh < win:                       # ceil(log2(win)) XLU rolls total
        c = c + jnp.where(wrow >= sh, pltpu.roll(c, shift=sh, axis=0), 0.0)
        sh *= 2
    inv_ks = 1.0 / float(ks)
    lbow = (c[ks:ks + tile_s] - c[0:tile_s]) * inv_ks
    rbow = (c[2 * ks + 1:2 * ks + 1 + tile_s]
            - c[ks + 1:ks + 1 + tile_s]) * inv_ks
    out_c = out_w[ks + 1:ks + 1 + tile_s]                       # (tile_s, AH)
    xn_c = xn[ks + 1:ks + 1 + tile_s]                           # (tile_s, isize)

    # ---- ctx LayerNorm over flat (nheads*adim), f32 ------------------------
    def ctx_ln(v):
        m = jnp.mean(v, axis=-1, keepdims=True)
        vv = jnp.maximum(jnp.mean(v * v, axis=-1, keepdims=True) - m * m, 0.0)
        return (v - m) * jax.lax.rsqrt(vv + EPS) * cw_ref[...] + cb_ref[...]

    lbow = ctx_ln(lbow)
    rbow = ctx_ln(rbow)

    # ---- grouped FFN: ONE fused block-diagonal W1 matmul, then W2 ----------
    # TODO(synk): for adim/hph >= MXU tile use per-head batched dot_general
    #             (head as batch dim) instead of block-diagonal weights.
    cat3 = jnp.concatenate([lbow.astype(mm_dt), out_c.astype(mm_dt),
                            rbow.astype(mm_dt)], axis=-1)       # (tile_s, 3*AH)
    h1 = jnp.dot(cat3, w1_ref[...],
                 preferred_element_type=jnp.float32) + b1_ref[...]
    h1 = jnp.maximum(h1, 0.0)                                   # (tile_s, hsize)
    net = jnp.dot(h1.astype(mm_dt), w2_ref[...],
                  preferred_element_type=jnp.float32) + b2_ref[...]  # (tile_s, AH)

    # ---- transo + residual (norm_residual=True -> add normalized input) ----
    res = jnp.dot(net.astype(mm_dt), wo_ref[...],
                  preferred_element_type=jnp.float32) + bo_ref[...]
    # NOTE: keep isize a multiple of 128 (256 on v6e/v7x) in production so
    # this store is a lane-dense unmasked vst.
    o_ref[0] = (res + xn_c).astype(o_ref.dtype)


def _block_diag(wg):
    """(H, din, dout) grouped weight -> (H*din, H*dout) block-diagonal matrix."""
    h, din, dout = wg.shape
    m = jnp.zeros((h, din, h, dout), wg.dtype)
    idx = jnp.arange(h)
    m = m.at[idx, :, idx, :].set(wg)
    return m.reshape(h * din, h * dout)


def prepare_weights(p, *, nheads, adim, matmul_dtype=jnp.bfloat16):
    """Host-side weight prep; call once and reuse (avoids per-call rebuilds)."""
    ahsize = nheads * adim
    hph = p["w1"].shape[-1]
    hsize = nheads * hph
    cast = lambda a: a.astype(matmul_dtype)
    w1 = p["w1"]                                        # (H, 3*adim, hph)
    w1_fused = jnp.concatenate(
        [_block_diag(w1[:, :adim]),                     # lbow part
         _block_diag(w1[:, adim:2 * adim]),             # out  part
         _block_diag(w1[:, 2 * adim:])], axis=0)        # rbow part -> (3*AH, hsize)
    return [
        p["ln_w"], p["ln_b"],                           # pre-norm LN (f32)
        cast(p["wi"]), p["bi"],                         # transi
        p["cw"], p["cb"],                               # ctx LN (f32)
        cast(w1_fused), p["b1"].reshape(1, hsize),
        cast(_block_diag(p["w2"])), p["b2"].reshape(1, ahsize),
        cast(p["wo"]), p["bo"],                         # transo
    ]


def bicffn_forward(x, p, *, nheads, adim, ks, matmul_dtype=jnp.bfloat16,
                   weights=None, tile_s=None):
    b, s, isize = x.shape
    ahsize = nheads * adim
    if weights is None:
        weights = prepare_weights(p, nheads=nheads, adim=adim,
                                  matmul_dtype=matmul_dtype)
    hsize = weights[6].shape[1]                         # fused W1 is (3*AH, hsize)

    # ---- sequence tiling with +-ks halo ------------------------------------
    if tile_s is None:
        tile_s = min(256, _round_up(s, 8))
    tile_s = _round_up(tile_s, 8)
    nt = pl.cdiv(s, tile_s)
    s_pad = nt * tile_s
    win = _round_up(tile_s + 2 * ks + 1, 8)             # sublane-aligned window
    lead = ks + 1                                       # left halo (+1 for cumsum)
    total = (nt - 1) * tile_s + win
    x_p = jnp.pad(x, ((0, 0), (lead, total - lead - s), (0, 0)))
    idx = (jnp.arange(nt) * tile_s)[:, None] + jnp.arange(win)[None, :]
    x_win = x_p[:, idx, :]                              # (B, nt, win, isize) overlapping

    kernel = functools.partial(bicffn_kernel, seq_len=s, tile_s=tile_s,
                               ks=ks, win=win)

    # ---- generation-aware VMEM budget --------------------------------------
    weight_bytes = sum(int(w.size) * w.dtype.itemsize for w in weights)
    try:
        vmem_cap = int(pltpu.get_tpu_info().vmem_capacity_bytes)
    except Exception:
        vmem_cap = 64 << 20
    # leave headroom for Mosaic-internal scratch: ~56 MiB on v7x, ~112 MiB v5e/v6e
    usable = vmem_cap - max(8 << 20, vmem_cap // 8)

    blk_in = win * isize * x.dtype.itemsize
    blk_out = tile_s * isize * x.dtype.itemsize
    inter = 4 * (win * (2 * isize + 2 * ahsize)
                 + tile_s * (9 * ahsize + 2 * hsize + 2 * isize))

    cost = pl.CostEstimate(
        flops=int(2 * b * s_pad * (2 * isize * ahsize + 3 * ahsize * hsize
                                   + hsize * ahsize)),
        transcendentals=int(3 * b * s_pad),
        bytes_accessed=int(x_win.size * x_win.dtype.itemsize
                           + b * s_pad * isize * x.dtype.itemsize + weight_bytes))

    def build(single_buffer_weights):
        def wspec(arr):
            if single_buffer_weights:
                return pl.BlockSpec(arr.shape, lambda bi, si: (0, 0),
                                    pipeline_mode=pl.Buffered(1))
            return pl.BlockSpec(arr.shape, lambda bi, si: (0, 0))

        wmult = 1 if single_buffer_weights else 2
        needed = (wmult * weight_bytes + 2 * (blk_in + blk_out)
                  + inter + (2 << 20))
        vmem_limit = int(min(max(needed, 32 << 20), usable))

        return pl.pallas_call(
            kernel,
            out_shape=jax.ShapeDtypeStruct((b, s_pad, isize), x.dtype),
            grid=(b, nt),
            in_specs=[pl.BlockSpec((1, 1, win, isize),
                                   lambda bi, si: (bi, si, 0, 0))]
                     + [wspec(w) for w in weights],
            out_specs=pl.BlockSpec((1, tile_s, isize),
                                   lambda bi, si: (bi, si, 0)),
            compiler_params=pltpu.CompilerParams(
                dimension_semantics=("parallel", "parallel"),
                vmem_limit_bytes=vmem_limit),
            cost_estimate=cost,
        )

    try:
        out = build(True)(x_win, *weights)
    except Exception:
        # Fallback if this Pallas build rejects pl.Buffered(1) single-buffering.
        out = build(False)(x_win, *weights)

    return out if s_pad == s else out[:, :s, :]


def bicffn_reference(x, p, *, nheads, adim, ks):
    """Pure-JAX f32 reference mirroring the PyTorch forward (mask=None)."""
    b, s, isize = x.shape
    ahsize = nheads * adim
    mu = x.mean(-1, keepdims=True)
    var = ((x - mu) ** 2).mean(-1, keepdims=True)
    xn = (x - mu) * jax.lax.rsqrt(var + EPS) * p["ln_w"][0] + p["ln_b"][0]
    out = xn @ p["wi"] + p["bi"][0]                               # (B, S, ahsize)

    pad = jnp.zeros((b, ks, ahsize), x.dtype)
    padded = jnp.concatenate([pad, out, pad], axis=1)             # (B, S+2ks, AH)
    pooled = jnp.stack([padded[:, t:t + ks].mean(axis=1)
                        for t in range(s + ks + 1)], axis=1)      # (B, S+ks+1, AH)
    m = pooled.mean(-1, keepdims=True)
    v = ((pooled - m) ** 2).mean(-1, keepdims=True)
    bow = (pooled - m) * jax.lax.rsqrt(v + EPS) * p["cw"][0] + p["cb"][0]
    lbow, rbow = bow[:, :s], bow[:, ks + 1:ks + 1 + s]

    cat = jnp.concatenate([lbow.reshape(b, s, nheads, adim),
                           out.reshape(b, s, nheads, adim),
                           rbow.reshape(b, s, nheads, adim)], axis=-1)
    h1 = jnp.maximum(jnp.einsum("bshx,hxy->bshy", cat, p["w1"])
                     + p["b1"][None, None], 0.0)
    o2 = jnp.einsum("bshy,hyd->bshd", h1, p["w2"]) + p["b2"][None, None]
    o2 = o2.reshape(b, s, ahsize)
    return o2 @ p["wo"] + p["bo"][0] + xn


def init_params(key, isize, nheads, adim, hsize, ks):
    ahsize = nheads * adim
    hph = hsize // nheads
    ks_ = jax.random.split(key, 6)

    def rnd(k, shape, fan_in):
        return (jax.random.normal(k, shape, jnp.float32) / np.sqrt(fan_in))

    return {
        "ln_w": jnp.ones((1, isize), jnp.float32),
        "ln_b": jnp.zeros((1, isize), jnp.float32),
        "wi": rnd(ks_[0], (isize, ahsize), isize),
        "bi": jnp.zeros((1, ahsize), jnp.float32),
        "cw": jnp.ones((1, ahsize), jnp.float32),      # ctx LN affine, flat (H*adim,)
        "cb": jnp.zeros((1, ahsize), jnp.float32),
        "w1": rnd(ks_[1], (nheads, 3 * adim, hph), 3 * adim),
        "b1": 0.01 * jax.random.normal(ks_[2], (nheads, hph), jnp.float32),
        "w2": rnd(ks_[3], (nheads, hph, adim), hph),
        "b2": 0.01 * jax.random.normal(ks_[4], (nheads, adim), jnp.float32),
        "wo": rnd(ks_[5], (ahsize, isize), ahsize),
        "bo": jnp.zeros((1, isize), jnp.float32),
    }


if __name__ == "__main__":
    # Small config: isize=32, num_head=4 -> attn_dim=8, ahsize=32, hsize=128.
    B, S, ISIZE = 2, 8, 32
    NHEADS, ADIM, KS = 4, 8, 5
    HSIZE = ISIZE * 4

    key = jax.random.PRNGKey(0)
    kx, kp = jax.random.split(key)
    x = jax.random.normal(kx, (B, S, ISIZE), jnp.float32)
    params = init_params(kp, ISIZE, NHEADS, ADIM, HSIZE, KS)

    weights = prepare_weights(params, nheads=NHEADS, adim=ADIM)   # once, reuse

    out = bicffn_forward(x, params, nheads=NHEADS, adim=ADIM, ks=KS,
                         weights=weights)
    out = jax.block_until_ready(out)

    ref = jax.block_until_ready(
        bicffn_reference(x, params, nheads=NHEADS, adim=ADIM, ks=KS))

    assert out.shape == (B, S, ISIZE)
    np.testing.assert_allclose(np.asarray(out), np.asarray(ref),
                               rtol=5e-2, atol=5e-2)
    print("KERNEL_OK")
</pallas_src>

<mosaic_0001>
module attributes {stable_mosaic.version = 11 : i64} {
  func.func @bicffn_kernel(%arg0: i32, %arg1: i32, %arg2: memref<1x1x24x32xf32, #tpu.memory_space<vmem>>, %arg3: memref<1x32xf32, #tpu.memory_space<vmem>>, %arg4: memref<1x32xf32, #tpu.memory_space<vmem>>, %arg5: memref<32x32xbf16, #tpu.memory_space<vmem>>, %arg6: memref<1x32xf32, #tpu.memory_space<vmem>>, %arg7: memref<1x32xf32, #tpu.memory_space<vmem>>, %arg8: memref<1x32xf32, #tpu.memory_space<vmem>>, %arg9: memref<96x128xbf16, #tpu.memory_space<vmem>>, %arg10: memref<1x128xf32, #tpu.memory_space<vmem>>, %arg11: memref<128x32xbf16, #tpu.memory_space<vmem>>, %arg12: memref<1x32xf32, #tpu.memory_space<vmem>>, %arg13: memref<32x32xbf16, #tpu.memory_space<vmem>>, %arg14: memref<1x32xf32, #tpu.memory_space<vmem>>, %arg15: memref<1x8x32xf32, #tpu.memory_space<vmem>>) attributes {dimension_semantics = [#tpu.dimension_semantics<parallel>, #tpu.dimension_semantics<parallel>], iteration_bounds = array<i64: 2, 1>, scalar_prefetch = 0 : i64, scratch_operands = 0 : i64, tpu.core_type = #tpu.core_type<tc>, window_params = [{transform_indices = @transform_0, window_bounds = array<i64: 1, 1, 24, 32>}, {pipeline_mode = #tpu.pipeline_mode<synchronous>, transform_indices = @transform_1, window_bounds = array<i64: 1, 32>}, {pipeline_mode = #tpu.pipeline_mode<synchronous>, transform_indices = @transform_2, window_bounds = array<i64: 1, 32>}, {pipeline_mode = #tpu.pipeline_mode<synchronous>, transform_indices = @transform_3, window_bounds = array<i64: 32, 32>}, {pipeline_mode = #tpu.pipeline_mode<synchronous>, transform_indices = @transform_4, window_bounds = array<i64: 1, 32>}, {pipeline_mode = #tpu.pipeline_mode<synchronous>, transform_indices = @transform_5, window_bounds = array<i64: 1, 32>}, {pipeline_mode = #tpu.pipeline_mode<synchronous>, transform_indices = @transform_6, window_bounds = array<i64: 1, 32>}, {pipeline_mode = #tpu.pipeline_mode<synchronous>, transform_indices = @transform_7, window_bounds = array<i64: 96, 128>}, {pipeline_mode = #tpu.pipeline_mode<synchronous>, transform_indices = @transform_8, window_bounds = array<i64: 1, 128>}, {pipeline_mode = #tpu.pipeline_mode<synchronous>, transform_indices = @transform_9, window_bounds = array<i64: 128, 32>}, {pipeline_mode = #tpu.pipeline_mode<synchronous>, transform_indices = @transform_10, window_bounds = array<i64: 1, 32>}, {pipeline_mode = #tpu.pipeline_mode<synchronous>, transform_indices = @transform_11, window_bounds = array<i64: 32, 32>}, {pipeline_mode = #tpu.pipeline_mode<synchronous>, transform_indices = @transform_12, window_bounds = array<i64: 1, 32>}, {transform_indices = @transform_13, window_bounds = array<i64: 1, 8, 32>}]} {
    %c0 = arith.constant 0 : index
    %c0_0 = arith.constant 0 : index
    %c0_1 = arith.constant 0 : index
    %c0_2 = arith.constant 0 : index
    %0 = vector.load %arg2[%c0, %c0_0, %c0_1, %c0_2] : memref<1x1x24x32xf32, #tpu.memory_space<vmem>>, vector<1x1x24x32xf32>
    %1 = vector.shape_cast %0 : vector<1x1x24x32xf32> to vector<24x32xf32>
    %cst = arith.constant dense<0.000000e+00> : vector<24xf32>
    %2 = vector.multi_reduction <add>, %1, %cst [1] : vector<24x32xf32> to vector<24xf32>
    %3 = vector.shape_cast %2 : vector<24xf32> to vector<24x1xf32>
    %cst_3 = arith.constant 3.200000e+01 : f32
    %4 = vector.broadcast %cst_3 : f32 to vector<24x1xf32>
    %5 = arith.divf %3, %4 : vector<24x1xf32>
    %6 = arith.mulf %1, %1 : vector<24x32xf32>
    %cst_4 = arith.constant dense<0.000000e+00> : vector<24xf32>
    %7 = vector.multi_reduction <add>, %6, %cst_4 [1] : vector<24x32xf32> to vector<24xf32>
    %8 = vector.shape_cast %7 : vector<24xf32> to vector<24x1xf32>
    %cst_5 = arith.constant 3.200000e+01 : f32
    %9 = vector.broadcast %cst_5 : f32 to vector<24x1xf32>
    %10 = arith.divf %8, %9 : vector<24x1xf32>
    %11 = arith.mulf %5, %5 : vector<24x1xf32>
    %12 = arith.subf %10, %11 : vector<24x1xf32>
    %cst_6 = arith.constant 0.000000e+00 : f32
    %13 = vector.broadcast %cst_6 : f32 to vector<24x1xf32>
    %14 = arith.maximumf %12, %13 : vector<24x1xf32>
    %15 = vector.broadcast %5 : vector<24x1xf32> to vector<24x32xf32>
    %16 = arith.subf %1, %15 : vector<24x32xf32>
    %cst_7 = arith.constant 9.99999997E-7 : f32
    %17 = vector.broadcast %cst_7 : f32 to vector<24x1xf32>
    %18 = arith.addf %14, %17 : vector<24x1xf32>
    %19 = math.rsqrt %18 : vector<24x1xf32>
    %20 = vector.broadcast %19 : vector<24x1xf32> to vector<24x32xf32>
    %21 = arith.mulf %16, %20 : vector<24x32xf32>
    %c0_8 = arith.constant 0 : index
    %c0_9 = arith.constant 0 : index
    %22 = vector.load %arg3[%c0_8, %c0_9] : memref<1x32xf32, #tpu.memory_space<vmem>>, vector<1x32xf32>
    %23 = vector.broadcast %22 : vector<1x32xf32> to vector<24x32xf32>
    %24 = arith.mulf %21, %23 : vector<24x32xf32>
    %c0_10 = arith.constant 0 : index
    %c0_11 = arith.constant 0 : index
    %25 = vector.load %arg4[%c0_10, %c0_11] : memref<1x32xf32, #tpu.memory_space<vmem>>, vector<1x32xf32>
    %26 = vector.broadcast %25 : vector<1x32xf32> to vector<24x32xf32>
    %27 = arith.addf %24, %26 : vector<24x32xf32>
    %28 = arith.truncf %27 : vector<24x32xf32> to vector<24x32xbf16>
    %c0_12 = arith.constant 0 : index
    %c0_13 = arith.constant 0 : index
    %29 = vector.load %arg5[%c0_12, %c0_13] : memref<32x32xbf16, #tpu.memory_space<vmem>>, vector<32x32xbf16>
    %cst_14 = arith.constant dense<0.000000e+00> : vector<24x32xf32>
    %30 = tpu.matmul %28, %29, %cst_14 {dimension_numbers = #tpu.dot_dimension_numbers<[1], [0], [0], [1], [0, 0, 1, 1], [], []>} : vector<24x32xbf16>, vector<32x32xbf16>, vector<24x32xf32> -> vector<24x32xf32>
    %c0_15 = arith.constant 0 : index
    %c0_16 = arith.constant 0 : index
    %31 = vector.load %arg6[%c0_15, %c0_16] : memref<1x32xf32, #tpu.memory_space<vmem>>, vector<1x32xf32>
    %32 = vector.broadcast %31 : vector<1x32xf32> to vector<24x32xf32>
    %33 = arith.addf %30, %32 : vector<24x32xf32>
    %34 = tpu.iota {dimensions = array<i32: 0>} : vector<24x1xi32>
    %c8_i32 = arith.constant 8 : i32
    %35 = arith.muli %arg1, %c8_i32 : i32
    %c6_i32 = arith.constant 6 : i32
    %36 = arith.subi %35, %c6_i32 : i32
    %37 = vector.broadcast %36 : i32 to vector<24x1xi32>
    %38 = arith.addi %37, %34 : vector<24x1xi32>
    %c0_i32 = arith.constant 0 : i32
    %39 = vector.broadcast %c0_i32 : i32 to vector<24x1xi32>
    %40 = arith.cmpi sge, %38, %39 : vector<24x1xi32>
    %c8_i32_17 = arith.constant 8 : i32
    %41 = vector.broadcast %c8_i32_17 : i32 to vector<24x1xi32>
    %42 = arith.cmpi slt, %38, %41 : vector<24x1xi32>
    %43 = arith.andi %40, %42 : vector<24x1xi1>
    %cst_18 = arith.constant 0.000000e+00 : f32
    %44 = vector.shape_cast %43 : vector<24x1xi1> to vector<24x1xi1>
    %45 = vector.broadcast %44 : vector<24x1xi1> to vector<24x32xi1>
    %46 = vector.broadcast %cst_18 : f32 to vector<24x32xf32>
    %47 = arith.select %45, %33, %46 : vector<24x32xi1>, vector<24x32xf32>
    %c1_i32 = arith.constant 1 : i32
    %48 = vector.broadcast %c1_i32 : i32 to vector<24x1xi32>
    %49 = arith.cmpi sge, %34, %48 : vector<24x1xi32>
    %c1_i32_19 = arith.constant 1 : i32
    %50 = tpu.dynamic_rotate %47 by %c1_i32_19 dim 0 : vector<24x32xf32>, i32 -> vector<24x32xf32>
    %cst_20 = arith.constant 0.000000e+00 : f32
    %51 = vector.shape_cast %49 : vector<24x1xi1> to vector<24x1xi1>
    %52 = vector.broadcast %51 : vector<24x1xi1> to vector<24x32xi1>
    %53 = vector.broadcast %cst_20 : f32 to vector<24x32xf32>
    %54 = arith.select %52, %50, %53 : vector<24x32xi1>, vector<24x32xf32>
    %55 = arith.addf %47, %54 : vector<24x32xf32>
    %c2_i32 = arith.constant 2 : i32
    %56 = vector.broadcast %c2_i32 : i32 to vector<24x1xi32>
    %57 = arith.cmpi sge, %34, %56 : vector<24x1xi32>
    %c2_i32_21 = arith.constant 2 : i32
    %58 = tpu.dynamic_rotate %55 by %c2_i32_21 dim 0 : vector<24x32xf32>, i32 -> vector<24x32xf32>
    %cst_22 = arith.constant 0.000000e+00 : f32
    %59 = vector.shape_cast %57 : vector<24x1xi1> to vector<24x1xi1>
    %60 = vector.broadcast %59 : vector<24x1xi1> to vector<24x32xi1>
    %61 = vector.broadcast %cst_22 : f32 to vector<24x32xf32>
    %62 = arith.select %60, %58, %61 : vector<24x32xi1>, vector<24x32xf32>
    %63 = arith.addf %55, %62 : vector<24x32xf32>
    %c4_i32 = arith.constant 4 : i32
    %64 = vector.broadcast %c4_i32 : i32 to vector<24x1xi32>
    %65 = arith.cmpi sge, %34, %64 : vector<24x1xi32>
    %c4_i32_23 = arith.constant 4 : i32
    %66 = tpu.dynamic_rotate %63 by %c4_i32_23 dim 0 : vector<24x32xf32>, i32 -> vector<24x32xf32>
    %cst_24 = arith.constant 0.000000e+00 : f32
    %67 = vector.shape_cast %65 : vector<24x1xi1> to vector<24x1xi1>
    %68 = vector.broadcast %67 : vector<24x1xi1> to vector<24x32xi1>
    %69 = vector.broadcast %cst_24 : f32 to vector<24x32xf32>
    %70 = arith.select %68, %66, %69 : vector<24x32xi1>, vector<24x32xf32>
    %71 = arith.addf %63, %70 : vector<24x32xf32>
    %c8_i32_25 = arith.constant 8 : i32
    %72 = vector.broadcast %c8_i32_25 : i32 to vector<24x1xi32>
    %73 = arith.cmpi sge, %34, %72 : vector<24x1xi32>
    %c8_i32_26 = arith.constant 8 : i32
    %74 = tpu.dynamic_rotate %71 by %c8_i32_26 dim 0 : vector<24x32xf32>, i32 -> vector<24x32xf32>
    %cst_27 = arith.constant 0.000000e+00 : f32
    %75 = vector.shape_cast %73 : vector<24x1xi1> to vector<24x1xi1>
    %76 = vector.broadcast %75 : vector<24x1xi1> to vector<24x32xi1>
    %77 = vector.broadcast %cst_27 : f32 to vector<24x32xf32>
    %78 = arith.select %76, %74, %77 : vector<24x32xi1>, vector<24x32xf32>
    %79 = arith.addf %71, %78 : vector<24x32xf32>
    %c16_i32 = arith.constant 16 : i32
    %80 = vector.broadcast %c16_i32 : i32 to vector<24x1xi32>
    %81 = arith.cmpi sge, %34, %80 : vector<24x1xi32>
    %c16_i32_28 = arith.constant 16 : i32
    %82 = tpu.dynamic_rotate %79 by %c16_i32_28 dim 0 : vector<24x32xf32>, i32 -> vector<24x32xf32>
    %cst_29 = arith.constant 0.000000e+00 : f32
    %83 = vector.shape_cast %81 : vector<24x1xi1> to vector<24x1xi1>
    %84 = vector.broadcast %83 : vector<24x1xi1> to vector<24x32xi1>
    %85 = vector.broadcast %cst_29 : f32 to vector<24x32xf32>
    %86 = arith.select %84, %82, %85 : vector<24x32xi1>, vector<24x32xf32>
    %87 = arith.addf %79, %86 : vector<24x32xf32>
    %88 = vector.extract_strided_slice %87 {offsets = [5, 0], sizes = [8, 32], strides = [1, 1]} : vector<24x32xf32> to vector<8x32xf32>
    %89 = vector.extract_strided_slice %87 {offsets = [0, 0], sizes = [8, 32], strides = [1, 1]} : vector<24x32xf32> to vector<8x32xf32>
    %90 = arith.subf %88, %89 : vector<8x32xf32>
    %cst_30 = arith.constant 2.000000e-01 : f32
    %91 = vector.broadcast %cst_30 : f32 to vector<8x32xf32>
    %92 = arith.mulf %90, %91 : vector<8x32xf32>
    %93 = vector.extract_strided_slice %87 {offsets = [11, 0], sizes = [8, 32], strides = [1, 1]} : vector<24x32xf32> to vector<8x32xf32>
    %94 = vector.extract_strided_slice %87 {offsets = [6, 0], sizes = [8, 32], strides = [1, 1]} : vector<24x32xf32> to vector<8x32xf32>
    %95 = arith.subf %93, %94 : vector<8x32xf32>
    %cst_31 = arith.constant 2.000000e-01 : f32
    %96 = vector.broadcast %cst_31 : f32 to vector<8x32xf32>
    %97 = arith.mulf %95, %96 : vector<8x32xf32>
    %98 = vector.extract_strided_slice %47 {offsets = [6, 0], sizes = [8, 32], strides = [1, 1]} : vector<24x32xf32> to vector<8x32xf32>
    %99 = vector.extract_strided_slice %27 {offsets = [6, 0], sizes = [8, 32], strides = [1, 1]} : vector<24x32xf32> to vector<8x32xf32>
    %cst_32 = arith.constant dense<0.000000e+00> : vector<8xf32>
    %100 = vector.multi_reduction <add>, %92, %cst_32 [1] : vector<8x32xf32> to vector<8xf32>
    %101 = vector.shape_cast %100 : vector<8xf32> to vector<8x1xf32>
    %cst_33 = arith.constant 3.200000e+01 : f32
    %102 = vector.broadcast %cst_33 : f32 to vector<8x1xf32>
    %103 = arith.divf %101, %102 : vector<8x1xf32>
    %104 = arith.mulf %92, %92 : vector<8x32xf32>
    %cst_34 = arith.constant dense<0.000000e+00> : vector<8xf32>
    %105 = vector.multi_reduction <add>, %104, %cst_34 [1] : vector<8x32xf32> to vector<8xf32>
    %106 = vector.shape_cast %105 : vector<8xf32> to vector<8x1xf32>
    %cst_35 = arith.constant 3.200000e+01 : f32
    %107 = vector.broadcast %cst_35 : f32 to vector<8x1xf32>
    %108 = arith.divf %106, %107 : vector<8x1xf32>
    %109 = arith.mulf %103, %103 : vector<8x1xf32>
    %110 = arith.subf %108, %109 : vector<8x1xf32>
    %cst_36 = arith.constant 0.000000e+00 : f32
    %111 = vector.broadcast %cst_36 : f32 to vector<8x1xf32>
    %112 = arith.maximumf %110, %111 : vector<8x1xf32>
    %113 = vector.broadcast %103 : vector<8x1xf32> to vector<8x32xf32>
    %114 = arith.subf %92, %113 : vector<8x32xf32>
    %cst_37 = arith.constant 9.99999997E-7 : f32
    %115 = vector.broadcast %cst_37 : f32 to vector<8x1xf32>
    %116 = arith.addf %112, %115 : vector<8x1xf32>
    %117 = math.rsqrt %116 : vector<8x1xf32>
    %118 = vector.broadcast %117 : vector<8x1xf32> to vector<8x32xf32>
    %119 = arith.mulf %114, %118 : vector<8x32xf32>
    %c0_38 = arith.constant 0 : index
    %c0_39 = arith.constant 0 : index
    %120 = vector.load %arg7[%c0_38, %c0_39] : memref<1x32xf32, #tpu.memory_space<vmem>>, vector<1x32xf32>
    %121 = vector.broadcast %120 : vector<1x32xf32> to vector<8x32xf32>
    %122 = arith.mulf %119, %121 : vector<8x32xf32>
    %c0_40 = arith.constant 0 : index
    %c0_41 = arith.constant 0 : index
    %123 = vector.load %arg8[%c0_40, %c0_41] : memref<1x32xf32, #tpu.memory_space<vmem>>, vector<1x32xf32>
    %124 = vector.broadcast %123 : vector<1x32xf32> to vector<8x32xf32>
    %125 = arith.addf %122, %124 : vector<8x32xf32>
    %cst_42 = arith.constant dense<0.000000e+00> : vector<8xf32>
    %126 = vector.multi_reduction <add>, %97, %cst_42 [1] : vector<8x32xf32> to vector<8xf32>
    %127 = vector.shape_cast %126 : vector<8xf32> to vector<8x1xf32>
    %cst_43 = arith.constant 3.200000e+01 : f32
    %128 = vector.broadcast %cst_43 : f32 to vector<8x1xf32>
    %129 = arith.divf %127, %128 : vector<8x1xf32>
    %130 = arith.mulf %97, %97 : vector<8x32xf32>
    %cst_44 = arith.constant dense<0.000000e+00> : vector<8xf32>
    %131 = vector.multi_reduction <add>, %130, %cst_44 [1] : vector<8x32xf32> to vector<8xf32>
    %132 = vector.shape_cast %131 : vector<8xf32> to vector<8x1xf32>
    %cst_45 = arith.constant 3.200000e+01 : f32
    %133 = vector.broadcast %cst_45 : f32 to vector<8x1xf32>
    %134 = arith.divf %132, %133 : vector<8x1xf32>
    %135 = arith.mulf %129, %129 : vector<8x1xf32>
    %136 = arith.subf %134, %135 : vector<8x1xf32>
    %cst_46 = arith.constant 0.000000e+00 : f32
    %137 = vector.broadcast %cst_46 : f32 to vector<8x1xf32>
    %138 = arith.maximumf %136, %137 : vector<8x1xf32>
    %139 = vector.broadcast %129 : vector<8x1xf32> to vector<8x32xf32>
    %140 = arith.subf %97, %139 : vector<8x32xf32>
    %cst_47 = arith.constant 9.99999997E-7 : f32
    %141 = vector.broadcast %cst_47 : f32 to vector<8x1xf32>
    %142 = arith.addf %138, %141 : vector<8x1xf32>
    %143 = math.rsqrt %142 : vector<8x1xf32>
    %144 = vector.broadcast %143 : vector<8x1xf32> to vector<8x32xf32>
    %145 = arith.mulf %140, %144 : vector<8x32xf32>
    %c0_48 = arith.constant 0 : index
    %c0_49 = arith.constant 0 : index
    %146 = vector.load %arg7[%c0_48, %c0_49] : memref<1x32xf32, #tpu.memory_space<vmem>>, vector<1x32xf32>
    %147 = vector.broadcast %146 : vector<1x32xf32> to vector<8x32xf32>
    %148 = arith.mulf %145, %147 : vector<8x32xf32>
    %c0_50 = arith.constant 0 : index
    %c0_51 = arith.constant 0 : index
    %149 = vector.load %arg8[%c0_50, %c0_51] : memref<1x32xf32, #tpu.memory_space<vmem>>, vector<1x32xf32>
    %150 = vector.broadcast %149 : vector<1x32xf32> to vector<8x32xf32>
    %151 = arith.addf %148, %150 : vector<8x32xf32>
    %152 = arith.truncf %125 : vector<8x32xf32> to vector<8x32xbf16>
    %153 = arith.truncf %98 : vector<8x32xf32> to vector<8x32xbf16>
    %154 = arith.truncf %151 : vector<8x32xf32> to vector<8x32xbf16>
    %155 = tpu.concatenate %152, %153, %154 in 1 : vector<8x32xbf16>, vector<8x32xbf16>, vector<8x32xbf16> -> vector<8x96xbf16>
    %c0_52 = arith.constant 0 : index
    %c0_53 = arith.constant 0 : index
    %156 = vector.load %arg9[%c0_52, %c0_53] : memref<96x128xbf16, #tpu.memory_space<vmem>>, vector<96x128xbf16>
    %cst_54 = arith.constant dense<0.000000e+00> : vector<8x128xf32>
    %157 = tpu.matmul %155, %156, %cst_54 {dimension_numbers = #tpu.dot_dimension_numbers<[1], [0], [0], [1], [0, 0, 1, 1], [], []>} : vector<8x96xbf16>, vector<96x128xbf16>, vector<8x128xf32> -> vector<8x128xf32>
    %c0_55 = arith.constant 0 : index
    %c0_56 = arith.constant 0 : index
    %158 = vector.load %arg10[%c0_55, %c0_56] : memref<1x128xf32, #tpu.memory_space<vmem>>, vector<1x128xf32>
    %159 = vector.broadcast %158 : vector<1x128xf32> to vector<8x128xf32>
    %160 = arith.addf %157, %159 : vector<8x128xf32>
    %cst_57 = arith.constant 0.000000e+00 : f32
    %161 = vector.broadcast %cst_57 : f32 to vector<8x128xf32>
    %162 = arith.maximumf %160, %161 : vector<8x128xf32>
    %163 = arith.truncf %162 : vector<8x128xf32> to vector<8x128xbf16>
    %c0_58 = arith.constant 0 : index
    %c0_59 = arith.constant 0 : index
    %164 = vector.load %arg11[%c0_58, %c0_59] : memref<128x32xbf16, #tpu.memory_space<vmem>>, vector<128x32xbf16>
    %cst_60 = arith.constant dense<0.000000e+00> : vector<8x32xf32>
    %165 = tpu.matmul %163, %164, %cst_60 {dimension_numbers = #tpu.dot_dimension_numbers<[1], [0], [0], [1], [0, 0, 1, 1], [], []>} : vector<8x128xbf16>, vector<128x32xbf16>, vector<8x32xf32> -> vector<8x32xf32>
    %c0_61 = arith.constant 0 : index
    %c0_62 = arith.constant 0 : index
    %166 = vector.load %arg12[%c0_61, %c0_62] : memref<1x32xf32, #tpu.memory_space<vmem>>, vector<1x32xf32>
    %167 = vector.broadcast %166 : vector<1x32xf32> to vector<8x32xf32>
    %168 = arith.addf %165, %167 : vector<8x32xf32>
    %169 = arith.truncf %168 : vector<8x32xf32> to vector<8x32xbf16>
    %c0_63 = arith.constant 0 : index
    %c0_64 = arith.constant 0 : index
    %170 = vector.load %arg13[%c0_63, %c0_64] : memref<32x32xbf16, #tpu.memory_space<vmem>>, vector<32x32xbf16>
    %cst_65 = arith.constant dense<0.000000e+00> : vector<8x32xf32>
    %171 = tpu.matmul %169, %170, %cst_65 {dimension_numbers = #tpu.dot_dimension_numbers<[1], [0], [0], [1], [0, 0, 1, 1], [], []>} : vector<8x32xbf16>, vector<32x32xbf16>, vector<8x32xf32> -> vector<8x32xf32>
    %c0_66 = arith.constant 0 : index
    %c0_67 = arith.constant 0 : index
    %172 = vector.load %arg14[%c0_66, %c0_67] : memref<1x32xf32, #tpu.memory_space<vmem>>, vector<1x32xf32>
    %173 = vector.broadcast %172 : vector<1x32xf32> to vector<8x32xf32>
    %174 = arith.addf %171, %173 : vector<8x32xf32>
    %175 = arith.addf %174, %99 : vector<8x32xf32>
    %c0_68 = arith.constant 0 : index
    %c0_69 = arith.constant 0 : index
    %c0_70 = arith.constant 0 : index
    %176 = vector.load %arg15[%c0_68, %c0_69, %c0_70] : memref<1x8x32xf32, #tpu.memory_space<vmem>>, vector<1x8x32xf32>
    %177 = vector.shape_cast %176 : vector<1x8x32xf32> to vector<8x32xf32>
    %178 = vector.shape_cast %175 : vector<8x32xf32> to vector<1x8x32xf32>
    tpu.vector_store %arg15[%c0_68, %c0_69, %c0_70], %178 {strides = array<i32>} : memref<1x8x32xf32, #tpu.memory_space<vmem>>, vector<1x8x32xf32>,
    return
  }
  func.func @transform_0(%arg0: i32, %arg1: i32) -> (i32, i32, i32, i32) {
    %c0_i32 = arith.constant 0 : i32
    %c0_i32_0 = arith.constant 0 : i32
    %c0_i32_1 = arith.constant 0 : i32
    return %arg0, %arg1, %c0_i32, %c0_i32_0 : i32, i32, i32, i32
  }
  func.func @transform_1(%arg0: i32, %arg1: i32) -> (i32, i32) {
    %c0_i32 = arith.constant 0 : i32
    %c0_i32_0 = arith.constant 0 : i32
    %c0_i32_1 = arith.constant 0 : i32
    return %c0_i32, %c0_i32_0 : i32, i32
  }
  func.func @transform_2(%arg0: i32, %arg1: i32) -> (i32, i32) {
    %c0_i32 = arith.constant 0 : i32
    %c0_i32_0 = arith.constant 0 : i32
    %c0_i32_1 = arith.constant 0 : i32
    return %c0_i32, %c0_i32_0 : i32, i32
  }
  func.func @transform_3(%arg0: i32, %arg1: i32) -> (i32, i32) {
    %c0_i32 = arith.constant 0 : i32
    %c0_i32_0 = arith.constant 0 : i32
    %c0_i32_1 = arith.constant 0 : i32
    return %c0_i32, %c0_i32_0 : i32, i32
  }
  func.func @transform_4(%arg0: i32, %arg1: i32) -> (i32, i32) {
    %c0_i32 = arith.constant 0 : i32
    %c0_i32_0 = arith.constant 0 : i32
    %c0_i32_1 = arith.constant 0 : i32
    return %c0_i32, %c0_i32_0 : i32, i32
  }
  func.func @transform_5(%arg0: i32, %arg1: i32) -> (i32, i32) {
    %c0_i32 = arith.constant 0 : i32
    %c0_i32_0 = arith.constant 0 : i32
    %c0_i32_1 = arith.constant 0 : i32
    return %c0_i32, %c0_i32_0 : i32, i32
  }
  func.func @transform_6(%arg0: i32, %arg1: i32) -> (i32, i32) {
    %c0_i32 = arith.constant 0 : i32
    %c0_i32_0 = arith.constant 0 : i32
    %c0_i32_1 = arith.constant 0 : i32
    return %c0_i32, %c0_i32_0 : i32, i32
  }
  func.func @transform_7(%arg0: i32, %arg1: i32) -> (i32, i32) {
    %c0_i32 = arith.constant 0 : i32
    %c0_i32_0 = arith.constant 0 : i32
    %c0_i32_1 = arith.constant 0 : i32
    return %c0_i32, %c0_i32_0 : i32, i32
  }
  func.func @transform_8(%arg0: i32, %arg1: i32) -> (i32, i32) {
    %c0_i32 = arith.constant 0 : i32
    %c0_i32_0 = arith.constant 0 : i32
    %c0_i32_1 = arith.constant 0 : i32
    return %c0_i32, %c0_i32_0 : i32, i32
  }
  func.func @transform_9(%arg0: i32, %arg1: i32) -> (i32, i32) {
    %c0_i32 = arith.constant 0 : i32
    %c0_i32_0 = arith.constant 0 : i32
    %c0_i32_1 = arith.constant 0 : i32
    return %c0_i32, %c0_i32_0 : i32, i32
  }
  func.func @transform_10(%arg0: i32, %arg1: i32) -> (i32, i32) {
    %c0_i32 = arith.constant 0 : i32
    %c0_i32_0 = arith.constant 0 : i32
    %c0_i32_1 = arith.constant 0 : i32
    return %c0_i32, %c0_i32_0 : i32, i32
  }
  func.func @transform_11(%arg0: i32, %arg1: i32) -> (i32, i32) {
    %c0_i32 = arith.constant 0 : i32
    %c0_i32_0 = arith.constant 0 : i32
    %c0_i32_1 = arith.constant 0 : i32
    return %c0_i32, %c0_i32_0 : i32, i32
  }
  func.func @transform_12(%arg0: i32, %arg1: i32) -> (i32, i32) {
    %c0_i32 = arith.constant 0 : i32
    %c0_i32_0 = arith.constant 0 : i32
    %c0_i32_1 = arith.constant 0 : i32
    return %c0_i32, %c0_i32_0 : i32, i32
  }
  func.func @transform_13(%arg0: i32, %arg1: i32) -> (i32, i32, i32) {
    %c0_i32 = arith.constant 0 : i32
    %c0_i32_0 = arith.constant 0 : i32
    return %arg0, %arg1, %c0_i32 : i32, i32, i32
  }
}

module attributes {stable_mosaic.version = 11 : i64} {
  func.func @bicffn_kernel(%arg0: i32, %arg1: i32, %arg2: memref<1x1x24x32xf32, #tpu.memory_space<vmem>>, %arg3: memref<1x32xf32, #tpu.memory_space<vmem>>, %arg4: memref<1x32xf32, #tpu.memory_space<vmem>>, %arg5: memref<32x32xbf16, #tpu.memory_space<vmem>>, %arg6: memref<1x32xf32, #tpu.memory_space<vmem>>, %arg7: memref<1x32xf32, #tpu.memory_space<vmem>>, %arg8: memref<1x32xf32, #tpu.memory_space<vmem>>, %arg9: memref<96x128xbf16, #tpu.memory_space<vmem>>, %arg10: memref<1x128xf32, #tpu.memory_space<vmem>>, %arg11: memref<128x32xbf16, #tpu.memory_space<vmem>>, %arg12: memref<1x32xf32, #tpu.memory_space<vmem>>, %arg13: memref<32x32xbf16, #tpu.memory_space<vmem>>, %arg14: memref<1x32xf32, #tpu.memory_space<vmem>>, %arg15: memref<1x8x32xf32, #tpu.memory_space<vmem>>) attributes {dimension_semantics = [#tpu.dimension_semantics<parallel>, #tpu.dimension_semantics<parallel>], iteration_bounds = array<i64: 2, 1>, scalar_prefetch = 0 : i64, scratch_operands = 0 : i64, tpu.core_type = #tpu.core_type<tc>, window_params = [{transform_indices = @transform_0, window_bounds = array<i64: 1, 1, 24, 32>}, {pipeline_mode = #tpu.pipeline_mode<synchronous>, transform_indices = @transform_1, window_bounds = array<i64: 1, 32>}, {pipeline_mode = #tpu.pipeline_mode<synchronous>, transform_indices = @transform_2, window_bounds = array<i64: 1, 32>}, {pipeline_mode = #tpu.pipeline_mode<synchronous>, transform_indices = @transform_3, window_bounds = array<i64: 32, 32>}, {pipeline_mode = #tpu.pipeline_mode<synchronous>, transform_indices = @transform_4, window_bounds = array<i64: 1, 32>}, {pipeline_mode = #tpu.pipeline_mode<synchronous>, transform_indices = @transform_5, window_bounds = array<i64: 1, 32>}, {pipeline_mode = #tpu.pipeline_mode<synchronous>, transform_indices = @transform_6, window_bounds = array<i64: 1, 32>}, {pipeline_mode = #tpu.pipeline_mode<synchronous>, transform_indices = @transform_7, window_bounds = array<i64: 96, 128>}, {pipeline_mode = #tpu.pipeline_mode<synchronous>, transform_indices = @transform_8, window_bounds = array<i64: 1, 128>}, {pipeline_mode = #tpu.pipeline_mode<synchronous>, transform_indices = @transform_9, window_bounds = array<i64: 128, 32>}, {pipeline_mode = #tpu.pipeline_mode<synchronous>, transform_indices = @transform_10, window_bounds = array<i64: 1, 32>}, {pipeline_mode = #tpu.pipeline_mode<synchronous>, transform_indices = @transform_11, window_bounds = array<i64: 32, 32>}, {pipeline_mode = #tpu.pipeline_mode<synchronous>, transform_indices = @transform_12, window_bounds = array<i64: 1, 32>}, {transform_indices = @transform_13, window_bounds = array<i64: 1, 8, 32>}]} {
    %c0 = arith.constant 0 : index
    %c0_0 = arith.constant 0 : index
    %c0_1 = arith.constant 0 : index
    %c0_2 = arith.constant 0 : index
    %0 = vector.load %arg2[%c0, %c0_0, %c0_1, %c0_2] : memref<1x1x24x32xf32, #tpu.memory_space<vmem>>, vector<1x1x24x32xf32>
    %1 = vector.shape_cast %0 : vector<1x1x24x32xf32> to vector<24x32xf32>
    %cst = arith.constant dense<0.000000e+00> : vector<24xf32>
    %2 = vector.multi_reduction <add>, %1, %cst [1] : vector<24x32xf32> to vector<24xf32>
    %3 = vector.shape_cast %2 : vector<24xf32> to vector<24x1xf32>
    %cst_3 = arith.constant 3.200000e+01 : f32
    %4 = vector.broadcast %cst_3 : f32 to vector<24x1xf32>
    %5 = arith.divf %3, %4 : vector<24x1xf32>
    %6 = arith.mulf %1, %1 : vector<24x32xf32>
    %cst_4 = arith.constant dense<0.000000e+00> : vector<24xf32>
    %7 = vector.multi_reduction <add>, %6, %cst_4 [1] : vector<24x32xf32> to vector<24xf32>
    %8 = vector.shape_cast %7 : vector<24xf32> to vector<24x1xf32>
    %cst_5 = arith.constant 3.200000e+01 : f32
    %9 = vector.broadcast %cst_5 : f32 to vector<24x1xf32>
    %10 = arith.divf %8, %9 : vector<24x1xf32>
    %11 = arith.mulf %5, %5 : vector<24x1xf32>
    %12 = arith.subf %10, %11 : vector<24x1xf32>
    %cst_6 = arith.constant 0.000000e+00 : f32
    %13 = vector.broadcast %cst_6 : f32 to vector<24x1xf32>
    %14 = arith.maximumf %12, %13 : vector<24x1xf32>
    %15 = vector.broadcast %5 : vector<24x1xf32> to vector<24x32xf32>
    %16 = arith.subf %1, %15 : vector<24x32xf32>
    %cst_7 = arith.constant 9.99999997E-7 : f32
    %17 = vector.broadcast %cst_7 : f32 to vector<24x1xf32>
    %18 = arith.addf %14, %17 : vector<24x1xf32>
    %19 = math.rsqrt %18 : vector<24x1xf32>
    %20 = vector.broadcast %19 : vector<24x1xf32> to vector<24x32xf32>
    %21 = arith.mulf %16, %20 : vector<24x32xf32>
    %c0_8 = arith.constant 0 : index
    %c0_9 = arith.constant 0 : index
    %22 = vector.load %arg3[%c0_8, %c0_9] : memref<1x32xf32, #tpu.memory_space<vmem>>, vector<1x32xf32>
    %23 = vector.broadcast %22 : vector<1x32xf32> to vector<24x32xf32>
    %24 = arith.mulf %21, %23 : vector<24x32xf32>
    %c0_10 = arith.constant 0 : index
    %c0_11 = arith.constant 0 : index
    %25 = vector.load %arg4[%c0_10, %c0_11] : memref<1x32xf32, #tpu.memory_space<vmem>>, vector<1x32xf32>
    %26 = vector.broadcast %25 : vector<1x32xf32> to vector<24x32xf32>
    %27 = arith.addf %24, %26 : vector<24x32xf32>
    %28 = arith.truncf %27 : vector<24x32xf32> to vector<24x32xbf16>
    %c0_12 = arith.constant 0 : index
    %c0_13 = arith.constant 0 : index
    %29 = vector.load %arg5[%c0_12, %c0_13] : memref<32x32xbf16, #tpu.memory_space<vmem>>, vector<32x32xbf16>
    %cst_14 = arith.constant dense<0.000000e+00> : vector<24x32xf32>
    %30 = tpu.matmul %28, %29, %cst_14 {dimension_numbers = #tpu.dot_dimension_numbers<[1], [0], [0], [1], [0, 0, 1, 1], [], []>} : vector<24x32xbf16>, vector<32x32xbf16>, vector<24x32xf32> -> vector<24x32xf32>
    %c0_15 = arith.constant 0 : index
    %c0_16 = arith.constant 0 : index
    %31 = vector.load %arg6[%c0_15, %c0_16] : memref<1x32xf32, #tpu.memory_space<vmem>>, vector<1x32xf32>
    %32 = vector.broadcast %31 : vector<1x32xf32> to vector<24x32xf32>
    %33 = arith.addf %30, %32 : vector<24x32xf32>
    %34 = tpu.iota {dimensions = array<i32: 0>} : vector<24x1xi32>
    %c8_i32 = arith.constant 8 : i32
    %35 = arith.muli %arg1, %c8_i32 : i32
    %c6_i32 = arith.constant 6 : i32
    %36 = arith.subi %35, %c6_i32 : i32
    %37 = vector.broadcast %36 : i32 to vector<24x1xi32>
    %38 = arith.addi %37, %34 : vector<24x1xi32>
    %c0_i32 = arith.constant 0 : i32
    %39 = vector.broadcast %c0_i32 : i32 to vector<24x1xi32>
    %40 = arith.cmpi sge, %38, %39 : vector<24x1xi32>
    %c8_i32_17 = arith.constant 8 : i32
    %41 = vector.broadcast %c8_i32_17 : i32 to vector<24x1xi32>
    %42 = arith.cmpi slt, %38, %41 : vector<24x1xi32>
    %43 = arith.andi %40, %42 : vector<24x1xi1>
    %cst_18 = arith.constant 0.000000e+00 : f32
    %44 = vector.shape_cast %43 : vector<24x1xi1> to vector<24x1xi1>
    %45 = vector.broadcast %44 : vector<24x1xi1> to vector<24x32xi1>
    %46 = vector.broadcast %cst_18 : f32 to vector<24x32xf32>
    %47 = arith.select %45, %33, %46 : vector<24x32xi1>, vector<24x32xf32>
    %c1_i32 = arith.constant 1 : i32
    %48 = vector.broadcast %c1_i32 : i32 to vector<24x1xi32>
    %49 = arith.cmpi sge, %34, %48 : vector<24x1xi32>
    %c1_i32_19 = arith.constant 1 : i32
    %50 = tpu.dynamic_rotate %47 by %c1_i32_19 dim 0 : vector<24x32xf32>, i32 -> vector<24x32xf32>
    %cst_20 = arith.constant 0.000000e+00 : f32
    %51 = vector.shape_cast %49 : vector<24x1xi1> to vector<24x1xi1>
    %52 = vector.broadcast %51 : vector<24x1xi1> to vector<24x32xi1>
    %53 = vector.broadcast %cst_20 : f32 to vector<24x32xf32>
    %54 = arith.select %52, %50, %53 : vector<24x32xi1>, vector<24x32xf32>
    %55 = arith.addf %47, %54 : vector<24x32xf32>
    %c2_i32 = arith.constant 2 : i32
    %56 = vector.broadcast %c2_i32 : i32 to vector<24x1xi32>
    %57 = arith.cmpi sge, %34, %56 : vector<24x1xi32>
    %c2_i32_21 = arith.constant 2 : i32
    %58 = tpu.dynamic_rotate %55 by %c2_i32_21 dim 0 : vector<24x32xf32>, i32 -> vector<24x32xf32>
    %cst_22 = arith.constant 0.000000e+00 : f32
    %59 = vector.shape_cast %57 : vector<24x1xi1> to vector<24x1xi1>
    %60 = vector.broadcast %59 : vector<24x1xi1> to vector<24x32xi1>
    %61 = vector.broadcast %cst_22 : f32 to vector<24x32xf32>
    %62 = arith.select %60, %58, %61 : vector<24x32xi1>, vector<24x32xf32>
    %63 = arith.addf %55, %62 : vector<24x32xf32>
    %c4_i32 = arith.constant 4 : i32
    %64 = vector.broadcast %c4_i32 : i32 to vector<24x1xi32>
    %65 = arith.cmpi sge, %34, %64 : vector<24x1xi32>
    %c4_i32_23 = arith.constant 4 : i32
    %66 = tpu.dynamic_rotate %63 by %c4_i32_23 dim 0 : vector<24x32xf32>, i32 -> vector<24x32xf32>
    %cst_24 = arith.constant 0.000000e+00 : f32
    %67 = vector.shape_cast %65 : vector<24x1xi1> to vector<24x1xi1>
    %68 = vector.broadcast %67 : vector<24x1xi1> to vector<24x32xi1>
    %69 = vector.broadcast %cst_24 : f32 to vector<24x32xf32>
    %70 = arith.select %68, %66, %69 : vector<24x32xi1>, vector<24x32xf32>
    %71 = arith.addf %63, %70 : vector<24x32xf32>
    %c8_i32_25 = arith.constant 8 : i32
    %72 = vector.broadcast %c8_i32_25 : i32 to vector<24x1xi32>
    %73 = arith.cmpi sge, %34, %72 : vector<24x1xi32>
    %c8_i32_26 = arith.constant 8 : i32
    %74 = tpu.dynamic_rotate %71 by %c8_i32_26 dim 0 : vector<24x32xf32>, i32 -> vector<24x32xf32>
    %cst_27 = arith.constant 0.000000e+00 : f32
    %75 = vector.shape_cast %73 : vector<24x1xi1> to vector<24x1xi1>
    %76 = vector.broadcast %75 : vector<24x1xi1> to vector<24x32xi1>
    %77 = vector.broadcast %cst_27 : f32 to vector<24x32xf32>
    %78 = arith.select %76, %74, %77 : vector<24x32xi1>, vector<24x32xf32>
    %79 = arith.addf %71, %78 : vector<24x32xf32>
    %c16_i32 = arith.constant 16 : i32
    %80 = vector.broadcast %c16_i32 : i32 to vector<24x1xi32>
    %81 = arith.cmpi sge, %34, %80 : vector<24x1xi32>
    %c16_i32_28 = arith.constant 16 : i32
    %82 = tpu.dynamic_rotate %79 by %c16_i32_28 dim 0 : vector<24x32xf32>, i32 -> vector<24x32xf32>
    %cst_29 = arith.constant 0.000000e+00 : f32
    %83 = vector.shape_cast %81 : vector<24x1xi1> to vector<24x1xi1>
    %84 = vector.broadcast %83 : vector<24x1xi1> to vector<24x32xi1>
    %85 = vector.broadcast %cst_29 : f32 to vector<24x32xf32>
    %86 = arith.select %84, %82, %85 : vector<24x32xi1>, vector<24x32xf32>
    %87 = arith.addf %79, %86 : vector<24x32xf32>
    %88 = vector.extract_strided_slice %87 {offsets = [5, 0], sizes = [8, 32], strides = [1, 1]} : vector<24x32xf32> to vector<8x32xf32>
    %89 = vector.extract_strided_slice %87 {offsets = [0, 0], sizes = [8, 32], strides = [1, 1]} : vector<24x32xf32> to vector<8x32xf32>
    %90 = arith.subf %88, %89 : vector<8x32xf32>
    %cst_30 = arith.constant 2.000000e-01 : f32
    %91 = vector.broadcast %cst_30 : f32 to vector<8x32xf32>
    %92 = arith.mulf %90, %91 : vector<8x32xf32>
    %93 = vector.extract_strided_slice %87 {offsets = [11, 0], sizes = [8, 32], strides = [1, 1]} : vector<24x32xf32> to vector<8x32xf32>
    %94 = vector.extract_strided_slice %87 {offsets = [6, 0], sizes = [8, 32], strides = [1, 1]} : vector<24x32xf32> to vector<8x32xf32>
    %95 = arith.subf %93, %94 : vector<8x32xf32>
    %cst_31 = arith.constant 2.000000e-01 : f32
    %96 = vector.broadcast %cst_31 : f32 to vector<8x32xf32>
    %97 = arith.mulf %95, %96 : vector<8x32xf32>
    %98 = vector.extract_strided_slice %47 {offsets = [6, 0], sizes = [8, 32], strides = [1, 1]} : vector<24x32xf32> to vector<8x32xf32>
    %99 = vector.extract_strided_slice %27 {offsets = [6, 0], sizes = [8, 32], strides = [1, 1]} : vector<24x32xf32> to vector<8x32xf32>
    %cst_32 = arith.constant dense<0.000000e+00> : vector<8xf32>
    %100 = vector.multi_reduction <add>, %92, %cst_32 [1] : vector<8x32xf32> to vector<8xf32>
    %101 = vector.shape_cast %100 : vector<8xf32> to vector<8x1xf32>
    %cst_33 = arith.constant 3.200000e+01 : f32
    %102 = vector.broadcast %cst_33 : f32 to vector<8x1xf32>
    %103 = arith.divf %101, %102 : vector<8x1xf32>
    %104 = arith.mulf %92, %92 : vector<8x32xf32>
    %cst_34 = arith.constant dense<0.000000e+00> : vector<8xf32>
    %105 = vector.multi_reduction <add>, %104, %cst_34 [1] : vector<8x32xf32> to vector<8xf32>
    %106 = vector.shape_cast %105 : vector<8xf32> to vector<8x1xf32>
    %cst_35 = arith.constant 3.200000e+01 : f32
    %107 = vector.broadcast %cst_35 : f32 to vector<8x1xf32>
    %108 = arith.divf %106, %107 : vector<8x1xf32>
    %109 = arith.mulf %103, %103 : vector<8x1xf32>
    %110 = arith.subf %108, %109 : vector<8x1xf32>
    %cst_36 = arith.constant 0.000000e+00 : f32
    %111 = vector.broadcast %cst_36 : f32 to vector<8x1xf32>
    %112 = arith.maximumf %110, %111 : vector<8x1xf32>
    %113 = vector.broadcast %103 : vector<8x1xf32> to vector<8x32xf32>
    %114 = arith.subf %92, %113 : vector<8x32xf32>
    %cst_37 = arith.constant 9.99999997E-7 : f32
    %115 = vector.broadcast %cst_37 : f32 to vector<8x1xf32>
    %116 = arith.addf %112, %115 : vector<8x1xf32>
    %117 = math.rsqrt %116 : vector<8x1xf32>
    %118 = vector.broadcast %117 : vector<8x1xf32> to vector<8x32xf32>
    %119 = arith.mulf %114, %118 : vector<8x32xf32>
    %c0_38 = arith.constant 0 : index
    %c0_39 = arith.constant 0 : index
    %120 = vector.load %arg7[%c0_38, %c0_39] : memref<1x32xf32, #tpu.memory_space<vmem>>, vector<1x32xf32>
    %121 = vector.broadcast %120 : vector<1x32xf32> to vector<8x32xf32>
    %122 = arith.mulf %119, %121 : vector<8x32xf32>
    %c0_40 = arith.constant 0 : index
    %c0_41 = arith.constant 0 : index
    %123 = vector.load %arg8[%c0_40, %c0_41] : memref<1x32xf32, #tpu.memory_space<vmem>>, vector<1x32xf32>
    %124 = vector.broadcast %123 : vector<1x32xf32> to vector<8x32xf32>
    %125 = arith.addf %122, %124 : vector<8x32xf32>
    %cst_42 = arith.constant dense<0.000000e+00> : vector<8xf32>
    %126 = vector.multi_reduction <add>, %97, %cst_42 [1] : vector<8x32xf32> to vector<8xf32>
    %127 = vector.shape_cast %126 : vector<8xf32> to vector<8x1xf32>
    %cst_43 = arith.constant 3.200000e+01 : f32
    %128 = vector.broadcast %cst_43 : f32 to vector<8x1xf32>
    %129 = arith.divf %127, %128 : vector<8x1xf32>
    %130 = arith.mulf %97, %97 : vector<8x32xf32>
    %cst_44 = arith.constant dense<0.000000e+00> : vector<8xf32>
    %131 = vector.multi_reduction <add>, %130, %cst_44 [1] : vector<8x32xf32> to vector<8xf32>
    %132 = vector.shape_cast %131 : vector<8xf32> to vector<8x1xf32>
    %cst_45 = arith.constant 3.200000e+01 : f32
    %133 = vector.broadcast %cst_45 : f32 to vector<8x1xf32>
    %134 = arith.divf %132, %133 : vector<8x1xf32>
    %135 = arith.mulf %129, %129 : vector<8x1xf32>
    %136 = arith.subf %134, %135 : vector<8x1xf32>
    %cst_46 = arith.constant 0.000000e+00 : f32
    %137 = vector.broadcast %cst_46 : f32 to vector<8x1xf32>
    %138 = arith.maximumf %136, %137 : vector<8x1xf32>
    %139 = vector.broadcast %129 : vector<8x1xf32> to vector<8x32xf32>
    %140 = arith.subf %97, %139 : vector<8x32xf32>
    %cst_47 = arith.constant 9.99999997E-7 : f32
    %141 = vector.broadcast %cst_47 : f32 to vector<8x1xf32>
    %142 = arith.addf %138, %141 : vector<8x1xf32>
    %143 = math.rsqrt %142 : vector<8x1xf32>
    %144 = vector.broadcast %143 : vector<8x1xf32> to vector<8x32xf32>
    %145 = arith.mulf %140, %144 : vector<8x32xf32>
    %c0_48 = arith.constant 0 : index
    %c0_49 = arith.constant 0 : index
    %146 = vector.load %arg7[%c0_48, %c0_49] : memref<1x32xf32, #tpu.memory_space<vmem>>, vector<1x32xf32>
    %147 = vector.broadcast %146 : vector<1x32xf32> to vector<8x32xf32>
    %148 = arith.mulf %145, %147 : vector<8x32xf32>
    %c0_50 = arith.constant 0 : index
    %c0_51 = arith.constant 0 : index
    %149 = vector.load %arg8[%c0_50, %c0_51] : memref<1x32xf32, #tpu.memory_space<vmem>>, vector<1x32xf32>
    %150 = vector.broadcast %149 : vector<1x32xf32> to vector<8x32xf32>
    %151 = arith.addf %148, %150 : vector<8x32xf32>
    %152 = arith.truncf %125 : vector<8x32xf32> to vector<8x32xbf16>
    %153 = arith.truncf %98 : vector<8x32xf32> to vector<8x32xbf16>
    %154 = arith.truncf %151 : vector<8x32xf32> to vector<8x32xbf16>
    %155 = tpu.concatenate %152, %153, %154 in 1 : vector<8x32xbf16>, vector<8x32xbf16>, vector<8x32xbf16> -> vector<8x96xbf16>
    %c0_52 = arith.constant 0 : index
    %c0_53 = arith.constant 0 : index
    %156 = vector.load %arg9[%c0_52, %c0_53] : memref<96x128xbf16, #tpu.memory_space<vmem>>, vector<96x128xbf16>
    %cst_54 = arith.constant dense<0.000000e+00> : vector<8x128xf32>
    %157 = tpu.matmul %155, %156, %cst_54 {dimension_numbers = #tpu.dot_dimension_numbers<[1], [0], [0], [1], [0, 0, 1, 1], [], []>} : vector<8x96xbf16>, vector<96x128xbf16>, vector<8x128xf32> -> vector<8x128xf32>
    %c0_55 = arith.constant 0 : index
    %c0_56 = arith.constant 0 : index
    %158 = vector.load %arg10[%c0_55, %c0_56] : memref<1x128xf32, #tpu.memory_space<vmem>>, vector<1x128xf32>
    %159 = vector.broadcast %158 : vector<1x128xf32> to vector<8x128xf32>
    %160 = arith.addf %157, %159 : vector<8x128xf32>
    %cst_57 = arith.constant 0.000000e+00 : f32
    %161 = vector.broadcast %cst_57 : f32 to vector<8x128xf32>
    %162 = arith.maximumf %160, %161 : vector<8x128xf32>
    %163 = arith.truncf %162 : vector<8x128xf32> to vector<8x128xbf16>
    %c0_58 = arith.constant 0 : index
    %c0_59 = arith.constant 0 : index
    %164 = vector.load %arg11[%c0_58, %c0_59] : memref<128x32xbf16, #tpu.memory_space<vmem>>, vector<128x32xbf16>
    %cst_60 = arith.constant dense<0.000000e+00> : vector<8x32xf32>
    %165 = tpu.matmul %163, %164, %cst_60 {dimension_numbers = #tpu.dot_dimension_numbers<[1], [0], [0], [1], [0, 0, 1, 1], [], []>} : vector<8x128xbf16>, vector<128x32xbf16>, vector<8x32xf32> -> vector<8x32xf32>
    %c0_61 = arith.constant 0 : index
    %c0_62 = arith.constant 0 : index
    %166 = vector.load %arg12[%c0_61, %c0_62] : memref<1x32xf32, #tpu.memory_space<vmem>>, vector<1x32xf32>
    %167 = vector.broadcast %166 : vector<1x32xf32> to vector<8x32xf32>
    %168 = arith.addf %165, %167 : vector<8x32xf32>
    %169 = arith.truncf %168 : vector<8x32xf32> to vector<8x32xbf16>
    %c0_63 = arith.constant 0 : index
    %c0_64 = arith.constant 0 : index
    %170 = vector.load %arg13[%c0_63, %c0_64] : memref<32x32xbf16, #tpu.memory_space<vmem>>, vector<32x32xbf16>
    %cst_65 = arith.constant dense<0.000000e+00> : vector<8x32xf32>
    %171 = tpu.matmul %169, %170, %cst_65 {dimension_numbers = #tpu.dot_dimension_numbers<[1], [0], [0], [1], [0, 0, 1, 1], [], []>} : vector<8x32xbf16>, vector<32x32xbf16>, vector<8x32xf32> -> vector<8x32xf32>
    %c0_66 = arith.constant 0 : index
    %c0_67 = arith.constant 0 : index
    %172 = vector.load %arg14[%c0_66, %c0_67] : memref<1x32xf32, #tpu.memory_space<vmem>>, vector<1x32xf32>
    %173 = vector.broadcast %172 : vector<1x32xf32> to vector<8x32xf32>
    %174 = arith.addf %171, %173 : vector<8x32xf32>
    %175 = arith.addf %174, %99 : vector<8x32xf32>
    %c0_68 = arith.constant 0 : index
    %c0_69 = arith.constant 0 : index
    %c0_70 = arith.constant 0 : index
    %176 = vector.load %arg15[%c0_68, %c0_69, %c0_70] : memref<1x8x32xf32, #tpu.memory_space<vmem>>, vector<1x8x32xf32>
    %177 = vector.shape_cast %176 : vector<1x8x32xf32> to vector<8x32xf32>
    %178 = vector.shape_cast %175 : vector<8x32xf32> to vector<1x8x32xf32>
    tpu.vector_store %arg15[%c0_68, %c0_69, %c0_70], %178 {strides = array<i32>} : memref<1x8x32xf32, #tpu.memory_space<vmem>>, vector<1x8x32xf32>,
    return
  }
  func.func @transform_0(%arg0: i32, %arg1: i32) -> (i32, i32, i32, i32) {
    %c0_i32 = arith.constant 0 : i32
    %c0_i32_0 = arith.constant 0 : i32
    %c0_i32_1 = arith.constant 0 : i32
    return %arg0, %arg1, %c0_i32, %c0_i32_0 : i32, i32, i32, i32
  }
  func.func @transform_1(%arg0: i32, %arg1: i32) -> (i32, i32) {
    %c0_i32 = arith.constant 0 : i32
    %c0_i32_0 = arith.constant 0 : i32
    %c0_i32_1 = arith.constant 0 : i32
    return %c0_i32, %c0_i32_0 : i32, i32
  }
  func.func @transform_2(%arg0: i32, %arg1: i32) -> (i32, i32) {
    %c0_i32 = arith.constant 0 : i32
    %c0_i32_0 = arith.constant 0 : i32
    %c0_i32_1 = arith.constant 0 : i32
    return %c0_i32, %c0_i32_0 : i32, i32
  }
  func.func @transform_3(%arg0: i32, %arg1: i32) -> (i32, i32) {
    %c0_i32 = arith.constant 0 : i32
    %c0_i32_0 = arith.constant 0 : i32
    %c0_i32_1 = arith.constant 0 : i32
    return %c0_i32, %c0_i32_0 : i32, i32
  }
  func.func @transform_4(%arg0: i32, %arg1: i32) -> (i32, i32) {
    %c0_i32 = arith.constant 0 : i32
    %c0_i32_0 = arith.constant 0 : i32
    %c0_i32_1 = arith.constant 0 : i32
    return %c0_i32, %c0_i32_0 : i32, i32
  }
  func.func @transform_5(%arg0: i32, %arg1: i32) -> (i32, i32) {
    %c0_i32 = arith.constant 0 : i32
    %c0_i32_0 = arith.constant 0 : i32
    %c0_i32_1 = arith.constant 0 : i32
    return %c0_i32, %c0_i32_0 : i32, i32
  }
  func.func @transform_6(%arg0: i32, %arg1: i32) -> (i32, i32) {
    %c0_i32 = arith.constant 0 : i32
    %c0_i32_0 = arith.constant 0 : i32
    %c0_i32_1 = arith.constant 0 : i32
    return %c0_i32, %c0_i32_0 : i32, i32
  }
  func.func @transform_7(%arg0: i32, %arg1: i32) -> (i32, i32) {
    %c0_i32 = arith.constant 0 : i32
    %c0_i32_0 = arith.constant 0 : i32
    %c0_i32_1 = arith.constant 0 : i32
    return %c0_i32, %c0_i32_0 : i32, i32
  }
  func.func @transform_8(%arg0: i32, %arg1: i32) -> (i32, i32) {
    %c0_i32 = arith.constant 0 : i32
    %c0_i32_0 = arith.constant 0 : i32
    %c0_i32_1 = arith.constant 0 : i32
    return %c0_i32, %c0_i32_0 : i32, i32
  }
  func.func @transform_9(%arg0: i32, %arg1: i32) -> (i32, i32) {
    %c0_i32 = arith.constant 0 : i32
    %c0_i32_0 = arith.constant 0 : i32
    %c0_i32_1 = arith.constant 0 : i32
    return %c0_i32, %c0_i32_0 : i32, i32
  }
  func.func @transform_10(%arg0: i32, %arg1: i32) -> (i32, i32) {
    %c0_i32 = arith.constant 0 : i32
    %c0_i32_0 = arith.constant 0 : i32
    %c0_i32_1 = arith.constant 0 : i32
    return %c0_i32, %c0_i32_0 : i32, i32
  }
  func.func @transform_11(%arg0: i32, %arg1: i32) -> (i32, i32) {
    %c0_i32 = arith.constant 0 : i32
    %c0_i32_0 = arith.constant 0 : i32
    %c0_i32_1 = arith.constant 0 : i32
    return %c0_i32, %c0_i32_0 : i32, i32
  }
  func.func @transform_12(%arg0: i32, %arg1: i32) -> (i32, i32) {
    %c0_i32 = arith.constant 0 : i32
    %c0_i32_0 = arith.constant 0 : i32
    %c0_i32_1 = arith.constant 0 : i32
    return %c0_i32, %c0_i32_0 : i32, i32
  }
  func.func @transform_13(%arg0: i32, %arg1: i32) -> (i32, i32, i32) {
    %c0_i32 = arith.constant 0 : i32
    %c0_i32_0 = arith.constant 0 : i32
    return %arg0, %arg1, %c0_i32 : i32, i32, i32
  }
}

</mosaic_0001>

<bundles_post_ra>
// kernel: tpu_custom_call.1
= control target key start
LH: loop header
LB: loop body
LE: loop exit
PB: predicated region body
PF: predicated region fallthrough
CT: control target
= control target key end

     0   :  { %18 = vsyncpa [#allocation3], 0  ;;  %s1996_s0 = inlined_call_operand.vmem [shape: f32[2,1,24,32], index: 0, kind: input, shape index: {}]   ;;  %s1997_s1 = inlined_call_operand.hbm [shape: f32[1,32], index: 1, kind: input, shape index: {}]   ;;  %s1998_s2 = inlined_call_operand.vmem [shape: f32[1,32], index: 2, kind: input, shape index: {}]   ;;  %s1999_s3 = inlined_call_operand.vmem [shape: bf16[32,32], index: 3, kind: input, shape index: {}]   ;;  %s2000_s4 = inlined_call_operand.vmem [shape: f32[1,32], index: 4, kind: input, shape index: {}]   ;;  %s2001_s5 = inlined_call_operand.vmem [shape: f32[1,32], index: 5, kind: input, shape index: {}]   ;;  %s2002_s6 = inlined_call_operand.vmem [shape: f32[1,32], index: 6, kind: input, shape index: {}]   ;;  %s2003_s7 = inlined_call_operand.hbm [shape: bf16[96,128], index: 7, kind: input, shape index: {}]   ;;  %s2004_s8 = inlined_call_operand.vmem [shape: f32[1,128], index: 8, kind: input, shape index: {}]   ;;  %s2005_s9 = inlined_call_operand.vmem [shape: bf16[128,32], index: 9, kind: input, shape index: {}]   ;;  %s2006_s10 = inlined_call_operand.vmem [shape: f32[1,32], index: 10, kind: input, shape index: {}]   ;;  %s2007_s11 = inlined_call_operand.vmem [shape: bf16[32,32], index: 11, kind: input, shape index: {}]   ;;  %s2008_s12 = inlined_call_operand.vmem [shape: f32[1,32], index: 12, kind: input, shape index: {}]   ;;  %s2009_s13 = inlined_call_operand.hbm [shape: f32[2,8,32], index: 13, kind: output, shape index: {}]  }
   0x1   :  { %19 = vsyncpa [#allocation6], 0 }
   0x2   :  { %20 = vsyncpa [#allocation4], 0 }
   0x3   :  { %22 = vsyncpa [#allocation4 + $0x1], 0  ;;  %s1709_s25 = smov 0   ;;  %s1711_s26 = smov 0  }
   0x4   :  { %s1713_s27 = smov 0   ;;  %s1715_s28 = smov 0  }
   0x5   :  { %s1717_s29 = smov 0   ;;  %s1719_s30 = smov 0  }
   0x6 LB: > { %2014 = sst [smem:[#allocation11_spill]] %s1617_s27  ;;  %s1267_s14 = sadd.s32 4294967295, %s1629_s30   ;;  %s1629_s30 = sphi %s1719_s30, %s28_s30   ;;  %s1625_s29 = sphi %s1717_s29, %s2027_s29   ;;  %s1621_s28 = sphi %s1715_s28, %s2026_s28   ;;  %s1617_s27 = sphi %s1713_s27, %s2025_s27   ;;  %s1613_s26 = sphi %s1711_s26, %s2029_s26   ;;  %s1609_s25 = sphi %s1709_s25, %s2028_s25  }
   0x7   : > { %2015 = sst [smem:[#allocation12_spill]] %s1625_s29  ;;  %s1268_s15 = sadd.s32 4294967294, %s1629_s30  }
   0x8   : > { %s40_s16 = sadd.s32 1, %s1625_s29  ;;  %s329_s17 = sadd.s32 1, %s1617_s27 }
   0x9   : > { %p42_p0 = scmp.ge.s32.totalorder %s40_s16, 2  ;;  %p339_p1 = scmp.ne.s32.totalorder %s1617_s27, %s1613_s26 }
   0xa   : > { %p340_p2 = scmp.eq.s32.totalorder %s1267_s14, 1  ;;  %p345_p3 = scmp.ne.s32.totalorder %s1613_s26, %s1609_s25 }
   0xb   : > { %s2031_s16 = smov (%p42_p0, %s40_s16), 0  ;;  %p346_p5 = scmp.eq.s32.totalorder %s1268_s15, 1 }
   0xc   : > { %2016 = sst [smem:[#allocation13_spill]] %s2031_s16  ;;  %p1749_p4 = por %p340_p2, %p339_p1 }
   0xd   : > { %s324_s19 = ssub.s32 %s1625_s29, %s2031_s16  ;;  %p1269_p6 = scmp.ge.s32.totalorder %s1629_s30, 1 }
   0xe   : > { %p327_p7 = scmp.eq.s32.totalorder %s324_s19, 0  ;;  %p1756_p8 = por %p346_p5, %p345_p3 }
   0xf   : > { %p353_p9 = scmp.lt.s32.totalorder %s1629_s30, 3  ;;  %p1768_p11 = scmp.eq.s32.totalorder %s1267_s14, 0 }
  0x10   : > { %s2018_s20 = scalar_select %p1756_p8, 1, 0 }
  0x11   : > { %s1762_s21 = scalar_select %p327_p7, %s1617_s27, %s329_s17  }
  0x12   : > { %2019 = sst [smem:[#allocation14_spill]] %s2018_s20  ;;  %p1764_p10 = pnand %p1269_p6, %p353_p9 }
  0x13   : > { %2020 = sst [smem:[#allocation15_spill]] %s1762_s21  ;;  %s365_s19 = sshll.u32 %s1997_s1, 4  ;;  %s366_s19 = int_to_ptr.hbm [resolvable:$true] %s365_s19 }
  0x14   : > { %p1387_p12 = pneg %p1764_p10  ;;  %s1631_s16 = smov [#allocation2]  }
  0x15   : > { %s367_s17 = sshll.u32 %s1631_s16, 4  ;;  %s391_s27 = sshll.u32 %s2003_s7, 4  ;;  %s368_s17 = int_to_ptr.vmem [resolvable:$true] %s367_s17  ;;  %s392_s27 = int_to_ptr.hbm [resolvable:$true] %s391_s27 }
  0x16   : > { %p1388_p13 = pnand %p1768_p11, %p1387_p12  ;;  %s1632_s14 = smov [#allocation5]  }
  0x17   : > { %s393_s20 = sshll.u32 %s1632_s14, 4  ;;  %s1633_s24 = smov 64   ;;  %s394_s20 = int_to_ptr.vmem [resolvable:$true] %s393_s20 }
  0x18   : > { %1390 = dma.hbm_to_vmem [thread:$0]  (!%p1388_p13), %s366_s19, 16, %s368_s17, [#allocation3]  }
  0x19   : > { %s1634_s15 = smov 4   ;;  %436 = sbr.rel (%p1764_p10) target bundleno = 1061 (0x425), region = 72 }
  0x1a   : > { %1393 = dma.hbm_to_vmem [thread:$0]  (!%p1388_p13), %s392_s27, 768, %s394_s20, [#allocation6], %s1633_s24, %s1633_s24, %s1634_s15  }
  0x1e   : > { %1596 = dma.done.wait (%p1768_p11), [#allocation3], 16  }
  0x1f   : > { %1598 = vsyncadd (%p1768_p11), [#allocation3], 4294967280 }
  0x20   : > { %1600 = dma.done.wait (%p1768_p11), [#allocation6], 768  }
  0x21   : > { %1602 = vsyncadd (%p1768_p11), [#allocation6], 4294966528  ;;  %p490_p0 = scmp.lt.s32.totalorder %s1621_s28, 1  ;;  %vm503_vm0 = vcmask 261120   ;;  %v1635_v8 = vmov 32.0   ;;  %v1359_v20 = vld [vmem:[%s1999_s3 + $0x8] sm:$0xff]  ;;  %v646_v61 = vlaneseq }
  0x22   : > { %1467 = vrcp.f32 %v1635_v8  ;;  %634 = vmatpush.bf16.msra.mxu0 %v1359_v20  ;;  %v1358_v22 = vld [vmem:[%s1999_s3] sm:$0xff]  ;;  %vm1144_vm8 = vcmask 1041408   ;;  %s1638_s19 = smov 64   ;;  %s487_s17 = sand.u32 1, %s1613_s26  }
  0x23   : > { %s491_s29 = scalar_select %p490_p0, %s1621_s28, 1  ;;  %v1822_v46 = vld [vmem:[#allocation2] ss:$0 sm:$0xff]  ;;  %v647_v62 = vshrl.u32 %v646_v61, 7 }
  0x24   : > { %v1829_v51 = vld [vmem:[%s1998_s2] ss:$0 sm:$0xff]  ;;  %s1276_s14 = sshll.u32 %s487_s17, 3  ;;  %s1355_s24 = sshll.u32 %s1621_s28, 3 }
  0x25   : > { %s1376_s27 = smul.u32 24, %s491_s29  ;;  %v653_v63 = vadd.s32 4294967290, %v647_v62  ;;  %vm680_vm10 = vcmp.lt.s32.totalorder %v647_v62, 1  ;;  %vm674_vm11 = vcmp.ge.s32.totalorder %v647_v62, 1  ;;  %vm702_vm13 = vcmp.lt.s32.totalorder %v647_v62, 2  ;;  %s1163_s16 = scalar_lea.hbm %s2009_s13, %s1355_s24 }
  0x26   : > { %635 = vmatpush.bf16.msra.mxu0 %v1358_v22  ;;  %vm696_vm14 = vcmp.ge.s32.totalorder %v647_v62, 2  ;;  %vm724_vm15 = vcmp.lt.s32.totalorder %v647_v62, 4  ;;  %s489_s20 = scalar_lea.vmem [#allocation7], %s1276_s14  ;;  %s1167_s23 = sshll.u32 %s1163_s16, 4  ;;  %s1168_s23 = int_to_ptr.hbm [resolvable:$true] %s1167_s23 }
  0x27   : > { %s1797_s21 = scalar_lea.vmem %s1996_s0, %s1376_s27  ;;  %vm656_vm9 = vcmp.ge.s32.totalorder %v653_v63, 0  ;;  %s1637_s27 = smov 32  }
  0x28   : > { %v500_v0 = vld [vmem:[%s1797_s21] sm:$0xff]  ;;  %v1802_v3 = vld [vmem:[%s1797_s21 + $0x8] sm:$0xff]  ;;  %v1468_v9 = vpop.eup %1467  ;;  %s1165_s22 = sshll.u32 %s489_s20, 4  ;;  %s1152_s28 = scalar_lea.sflag [#allocation4], %s487_s17  ;;  %s1166_s22 = int_to_ptr.vmem [resolvable:$true] %s1165_s22 }
  0x29   : > { %v504_v1 = vsel %vm503_vm0, %v500_v0, 0.0  ;;  %v523_v2 = vmul.f32 %v500_v0, %v500_v0  ;;  %v524_v5 = vmul.f32 %v1802_v3, %v1802_v3  ;;  %v507_v6 = vsel %vm503_vm0, %v1802_v3, 0.0  ;;  %s1563_s14 = scalar_lea.hbm %s2009_s13, 16 }
  0x2a   : > { %505 = vadd.xlane.f32.xlu0 %v504_v1  ;;  %v514_v10 = vmul.f32 32.0, %v1468_v9  ;;  %vm518_vm1 = vweird.f32 %v1468_v9 }
  0x2b   : > { %v526_v4 = vsel %vm503_vm0, %v523_v2, 0.0  ;;  %v529_v7 = vsel %vm503_vm0, %v524_v5, 0.0  ;;  %v648_v2 = vadd.s32 8, %v647_v62 }
  0x2c   : > { %527 = vadd.xlane.f32.xlu1 %v526_v4  ;;  %v515_v11 = vsub.f32 1.0, %v514_v10  ;;  %v1636_v4 = vmov 0.0  }
  0x2d   : > { %v679_v5 = vrot.slane %v1636_v4, 7  ;;  %v654_v8 = vadd.s32 4294967290, %v648_v2 }
  0x2e   : > { %v516_v12 = vmul.f32 %v1468_v9, %v515_v11 }
  0x2f   : > { %vm660_vm12 = vcmp.lt.s32.totalorder %v654_v8, 8 }
  0x30   : > { %v517_v13 = vadd.f32 %v1468_v9, %v516_v12 }
  0x32   : > { %508 = vadd.xlane.f32.xlu0 %v507_v6  ;;  %v1810_v14 = vsel %vm518_vm1, %v1468_v9, %v517_v13  ;;  %vm718_vm1 = vcmp.ge.s32.totalorder %v647_v62, 4 }
  0x34   : > { %530 = vadd.xlane.f32.xlu1 %v529_v7 }
  0x9d   : > { %v506_v15 = vpop.xlane.xlu0 %505 }
  0x9e   : > { %v520_v16 = vmul.f32 %v1810_v14, %v506_v15 }
  0x9f   : > { %v528_v17 = vpop.xlane.xlu1 %527 }
  0xa0   : > { %v538_v18 = vmul.f32 %v520_v16, %v520_v16  ;;  %v535_v19 = vmul.f32 %v528_v17, %v1810_v14  ;;  %v547_v43 = vsub.f32 %v500_v0, %v520_v16  ;;  %v1461_v0 = vld [vmem:[%s2000_s4] ss:$0 sm:$0xff] }
  0xa2   : > { %v541_v21 = vsub.f32 %v535_v19, %v538_v18 }
  0xa4   : > { %v544_v23 = vmax.f32 %v541_v21, 0.0 }
  0xa5   : > { %v509_v24 = vpop.xlane.xlu0 %508 }
  0xa6   : > { %v550_v25 = vadd.f32 1e-06, %v544_v23  ;;  %v521_v26 = vmul.f32 %v1810_v14, %v509_v24 }
  0xa7   : > { %v531_v27 = vpop.xlane.xlu1 %530 }
  0xa8   : > { %1469 = vrsqrt.f32 %v550_v25  ;;  %v539_v28 = vmul.f32 %v521_v26, %v521_v26  ;;  %v536_v29 = vmul.f32 %v531_v27, %v1810_v14  ;;  %vm559_vm3 = vweird.f32 %v550_v25 }
  0xa9   : > { %v548_v49 = vsub.f32 %v1802_v3, %v521_v26 }
  0xaa   : > { %v542_v30 = vsub.f32 %v536_v29, %v539_v28 }
  0xac   : > { %v545_v31 = vmax.f32 %v542_v30, 0.0 }
  0xae   : > { %v1470_v32 = vpop.eup %1469  ;;  %v551_v34 = vadd.f32 1e-06, %v545_v31 }
  0xaf   : > { %v554_v33 = vmul.f32 %v1470_v32, %v550_v25  ;;  %vm560_vm2 = vweird.f32 %v1470_v32 }
  0xb0   : > { %1471 = vrsqrt.f32 %v551_v34  ;;  %vm561_vm4 = vmor %vm559_vm3, %vm560_vm2  ;;  %vm569_vm6 = vweird.f32 %v551_v34  ;;  %vm778_vm2 = vcmask 1044480   ;;  %vm851_vm3 = vcmask 261123  }
  0xb1   : > { %v555_v35 = vmul.f32 %v1470_v32, %v554_v33 }
  0xb3   : > { %v556_v36 = vmul.f32 0.5, %v555_v35 }
  0xb5   : > { %v557_v37 = vsub.f32 1.5, %v556_v36 }
  0xb6   : > { %v1472_v38 = vpop.eup %1471 }
  0xb7   : > { %v558_v39 = vmul.f32 %v1470_v32, %v557_v37  ;;  %v564_v40 = vmul.f32 %v1472_v38, %v551_v34  ;;  %vm570_vm5 = vweird.f32 %v1472_v38 }
  0xb8   : > { %vm571_vm7 = vmor %vm569_vm6, %vm570_vm5  ;;  %vm791_vm5 = vcmask 258048   ;;  %vm787_vm6 = vcmask 261125  }
  0xb9   : > { %v565_v41 = vmul.f32 %v1472_v38, %v564_v40  ;;  %v562_v42 = vsel %vm561_vm4, %v1470_v32, %v558_v39  ;;  %vm855_vm4 = vcmask 256000  }
  0xba   : > { %v583_v45 = vmul.f32 %v562_v42, %v547_v43 }
  0xbb   : > { %v566_v44 = vmul.f32 0.5, %v565_v41 }
  0xbc   : > { %v590_v50 = vmul.f32 %v1822_v46, %v583_v45 }
  0xbd   : > { %v567_v47 = vsub.f32 1.5, %v566_v44 }
  0xbe   : > { %v597_v55 = vadd.f32 %v1829_v51, %v590_v50 }
  0xbf   : > { %v568_v48 = vmul.f32 %v1472_v38, %v567_v47 }
  0xc0   : > { %v1145_v58 = vrot.slane %v597_v55, 6 }
  0xc1   : > { %v572_v52 = vsel %vm571_vm7, %v1472_v38, %v568_v48 }
  0xc2   : > { %v584_v53 = vmul.f32 %v572_v52, %v548_v49 }
  0xc4   : > { %v591_v54 = vmul.f32 %v1822_v46, %v584_v53 }
  0xc6   : > { %v598_v56 = vadd.f32 %v1829_v51, %v591_v54 }
  0xc8   : > { %v600_v57 = vpack.c.bf16 %v598_v56, %v597_v55  ;;  %v1146_v59 = vrot.slane %v598_v56, 6 }
  0xca   : > { %1286 = vmatmul.msk.bf16.vlgmr.msra.gmra.mxu0 %vm503_vm0, %v600_v57  ;;  %v1835_v60 = vsel %vm1144_vm8, %v1145_v58, %v1146_v59 }
 0x147   : > { %v637_v1 = vpop.f32.mrf.mxu0 }
 0x148   : > { %v638_v3 = vadd.f32 %v1461_v0, %v637_v1 }
 0x14a   : > { %v1840_v6 = vsel %vm656_vm9, %v638_v3, 0.0 }
 0x14b   : > { %v677_v7 = vrot.slane %v1840_v6, 7  ;;  %v909_v3 = vpack.c.bf16 %v1840_v6, %v1840_v6 }
 0x14d   : > { %v683_v9 = vsel %vm680_vm10, %v679_v5, %v677_v7 }
 0x14e   : > { %v690_v10 = vsel %vm674_vm11, %v683_v9, 0.0 }
 0x14f   : > { %v639_v11 = vpop.f32.mrf.mxu0  ;;  %v693_v13 = vadd.f32 %v690_v10, %v1840_v6 }
 0x150   : > { %v640_v12 = vadd.f32 %v1461_v0, %v639_v11 }
 0x151   : > { %v699_v19 = vrot.slane %v693_v13, 6 }
 0x152   : > { %v1844_v15 = vsel %vm660_vm12, %v640_v12, 0.0 }
 0x153   : > { %v678_v16 = vrot.slane %v1844_v15, 7  ;;  %v910_v0 = vpack.c.bf16 %v1844_v15, %v1844_v15 }
 0x155   : > { %v681_v17 = vsel %vm680_vm10, %v678_v16, %v679_v5  ;;  %v682_v18 = vsel %vm680_vm10, %v677_v7, %v678_v16  ;;  %v921_v4 = vunpack.c.l.b16 %v910_v0  ;;  %v920_v5 = vunpack.c.l.b16 %v909_v3 }
 0x156   : > { %v694_v20 = vadd.f32 %v682_v18, %v1844_v15  ;;  %v701_v21 = vrot.slane %v681_v17, 6 }
 0x157   : > { %v922_v8 = vpack.c.b16 %v921_v4, %v920_v5  ;;  %v1365_v4 = vld [vmem:[#allocation5 + $0x28] sm:$0xff] }
 0x158   : > { %v700_v22 = vrot.slane %v694_v20, 6  ;;  %v705_v23 = vsel %vm702_vm13, %v701_v21, %v699_v19  ;;  %1011 = vmatpush.bf16.msra.mxu1 %v1365_v4 }
 0x159   : > { %v712_v24 = vsel %vm696_vm14, %v705_v23, 0.0  ;;  %v926_v10 = vshll.u32 %v922_v8, 16 }
 0x15a   : > { %v703_v25 = vsel %vm702_vm13, %v700_v22, %v701_v21  ;;  %v704_v26 = vsel %vm702_vm13, %v699_v19, %v700_v22  ;;  %v715_v27 = vadd.f32 %v712_v24, %v693_v13  ;;  %v924_v13 = vshrl.u32 %v922_v8, 16 }
 0x15b   : > { %v716_v28 = vadd.f32 %v704_v26, %v694_v20  ;;  %v717_v29 = vadd.f32 %v703_v25, %v681_v17  ;;  %v928_v12 = vrot.slane %v926_v10, 1 }
 0x15c   : > { %v721_v30 = vrot.slane %v715_v27, 4 }
 0x15d   : > { %v722_v31 = vrot.slane %v716_v28, 4  ;;  %v723_v32 = vrot.slane %v717_v29, 4  ;;  %v929_v15 = vor.u32 %v928_v12, %v924_v13 }
 0x15f   : > { %v725_v33 = vsel %vm724_vm15, %v722_v31, %v723_v32  ;;  %v726_v34 = vsel %vm724_vm15, %v721_v30, %v722_v31  ;;  %v727_v35 = vsel %vm724_vm15, %v723_v32, %v721_v30 }
 0x160   : > { %v734_v36 = vsel %vm718_vm1, %v727_v35, 0.0  ;;  %v738_v37 = vadd.f32 %v726_v34, %v716_v28  ;;  %v739_v38 = vadd.f32 %v725_v33, %v717_v29 }
 0x161   : > { %v737_v39 = vadd.f32 %v734_v36, %v715_v27 }
 0x162   : > { %v754_v40 = vadd.f32 %v739_v38, %v738_v37 }
 0x163   : > { %v753_v41 = vadd.f32 %v738_v37, %v737_v39  ;;  %v771_v43 = vrot.slane %v737_v39, 3 }
 0x164   : > { %v769_v42 = vadd.f32 %v754_v40, %v737_v39 }
 0x165   : > { %v779_v44 = vrot.slane %v753_v41, 3  ;;  %v773_v50 = vsub.f32 %v737_v39, %v771_v43  ;;  %v774_v59 = vsub.f32 %v753_v41, %v771_v43 }
 0x167   : > { %v780_v45 = vsel %vm778_vm2, %v771_v43, %v779_v44  ;;  %v784_v47 = vsub.f32 %v769_v42, %v779_v44  ;;  %v1857_v57 = vmul.f32 0.2, %v773_v50  ;;  %v1861_v62 = vmul.f32 0.2, %v774_v59 }
 0x168   : > { %v783_v48 = vsub.f32 %v753_v41, %v780_v45 }
 0x169   : > { %v1848_v49 = vmul.f32 0.2, %v784_v47  ;;  %v797_v61 = vmul.f32 %v1857_v57, %v1857_v57  ;;  %v792_v2 = vsel %vm791_vm5, %v1861_v62, 0.0  ;;  %v788_v7 = vsel %vm787_vm6, %v1857_v57, 0.0 }
 0x16a   : > { %v1850_v52 = vmul.f32 0.2, %v783_v48  ;;  %v798_v9 = vmul.f32 %v1861_v62, %v1861_v62 }
 0x16b   : > { %v862_v53 = vmul.f32 %v1848_v49, %v1848_v49  ;;  %v856_v63 = vsel %vm855_vm4, %v1848_v49, 0.0  ;;  %v799_v1 = vsel %vm787_vm6, %v797_v61, 0.0 }
 0x16c   : > { %v852_v54 = vsel %vm851_vm3, %v1850_v52, 0.0  ;;  %v861_v55 = vmul.f32 %v1850_v52, %v1850_v52  ;;  %v802_v11 = vsel %vm791_vm5, %v798_v9, 0.0  ;;  %v1364_v9 = vld [vmem:[#allocation5 + $0x20] sm:$0xff]  ;;  %vm1005_vm5 = vcmask 785408  }
 0x16d   : > { %853 = vadd.xlane.f32.xlu2 %v852_v54  ;;  %v866_v56 = vsel %vm855_vm4, %v862_v53, 0.0  ;;  %1012 = vmatpush.bf16.msra.mxu1 %v1364_v9  ;;  %vm943_vm4 = vcmask 523264  }
 0x16e   : > { %867 = vadd.xlane.f32.xlu1 %v866_v56  ;;  %v863_v58 = vsel %vm851_vm3, %v861_v55, 0.0 }
 0x16f   : > { %864 = vadd.xlane.f32.xlu0 %v863_v58 }
 0x175   : > { %857 = vadd.xlane.f32.xlu2 %v856_v63  ;;  %v1462_v63 = vld [vmem:[%s2001_s5] ss:$0 sm:$0xff] }
 0x176   : > { %800 = vadd.xlane.f32.xlu1 %v799_v1 }
 0x177   : > { %793 = vadd.xlane.f32.xlu0 %v792_v2 }
 0x17d   : > { %789 = vadd.xlane.f32.xlu2 %v788_v7 }
 0x185   : > { %803 = vadd.xlane.f32.xlu2 %v802_v11 }
 0x18b   : > { %930 = vrot.lane.b32.xlu0 %v929_v15, %s1637_s27 }
 0x1e0   : > { %v854_v6 = vpop.xlane.xlu2 %853 }
 0x1e1   : > { %v859_v16 = vmul.f32 %v854_v6, %v1810_v14  ;;  %v868_v21 = vpop.xlane.xlu1 %867 }
 0x1e2   : > { %v865_v17 = vpop.xlane.xlu0 %864  ;;  %v870_v26 = vmul.f32 %v868_v21, %v1810_v14 }
 0x1e3   : > { %v871_v18 = vmul.f32 %v859_v16, %v859_v16  ;;  %v869_v19 = vmul.f32 %v865_v17, %v1810_v14  ;;  %v877_v56 = vsub.f32 %v1850_v52, %v859_v16  ;;  %v1463_v52 = vld [vmem:[%s2002_s6] ss:$0 sm:$0xff] }
 0x1e4   : > { %v1363_v17 = vld [vmem:[#allocation5 + $0x18] sm:$0xff] }
 0x1e5   : > { %v873_v20 = vsub.f32 %v869_v19, %v871_v18  ;;  %1013 = vmatpush.bf16.msra.mxu1 %v1363_v17 }
 0x1e7   : > { %v875_v22 = vmax.f32 %v873_v20, 0.0 }
 0x1e8   : > { %v858_v23 = vpop.xlane.xlu2 %857 }
 0x1e9   : > { %v879_v24 = vadd.f32 1e-06, %v875_v22  ;;  %v860_v25 = vmul.f32 %v858_v23, %v1810_v14  ;;  %v801_v30 = vpop.xlane.xlu1 %800 }
 0x1ea   : > { %v794_v36 = vpop.xlane.xlu0 %793  ;;  %v805_v37 = vmul.f32 %v801_v30, %v1810_v14 }
 0x1eb   : > { %1473 = vrsqrt.f32 %v879_v24  ;;  %v872_v27 = vmul.f32 %v860_v25, %v860_v25  ;;  %v1885_v40 = vmul.f32 %v794_v36, %v1810_v14  ;;  %vm887_vm8 = vweird.f32 %v879_v24 }
 0x1ec   : > { %v878_v12 = vsub.f32 %v1848_v49, %v860_v25 }
 0x1ed   : > { %v874_v28 = vsub.f32 %v870_v26, %v872_v27  ;;  %v808_v48 = vmul.f32 %v1885_v40, %v1885_v40  ;;  %v1362_v26 = vld [vmem:[#allocation5 + $0x10] sm:$0xff] }
 0x1ee   : > { %1014 = vmatpush.bf16.msra.mxu1 %v1362_v26 }
 0x1ef   : > { %v876_v29 = vmax.f32 %v874_v28, 0.0 }
 0x1f0   : > { %v790_v31 = vpop.xlane.xlu2 %789 }
 0x1f1   : > { %v1474_v32 = vpop.eup %1473  ;;  %v880_v33 = vadd.f32 1e-06, %v876_v29  ;;  %v1879_v34 = vmul.f32 %v790_v31, %v1810_v14 }
 0x1f2   : > { %v882_v35 = vmul.f32 %v1474_v32, %v879_v24  ;;  %vm888_vm7 = vweird.f32 %v1474_v32 }
 0x1f3   : > { %1475 = vrsqrt.f32 %v880_v33  ;;  %v807_v38 = vmul.f32 %v1879_v34, %v1879_v34  ;;  %vm889_vm9 = vmor %vm887_vm8, %vm888_vm7  ;;  %vm897_vm11 = vweird.f32 %v880_v33  ;;  %v813_v25 = vsub.f32 %v1857_v57, %v1879_v34 }
 0x1f4   : > { %v883_v39 = vmul.f32 %v1474_v32, %v882_v35 }
 0x1f5   : > { %v809_v41 = vsub.f32 %v805_v37, %v807_v38 }
 0x1f6   : > { %v884_v42 = vmul.f32 0.5, %v883_v39  ;;  %v814_v39 = vsub.f32 %v1861_v62, %v1885_v40  ;;  %v1903_v62 = vld [vmem:[%s1797_s21 + $0x10] sm:$0xff]  ;;  %v1373_v40 = vld [vmem:[%s2005_s9 + $0x38] sm:$0xff] }
 0x1f7   : > { %v811_v43 = vmax.f32 %v809_v41, 0.0  ;;  %1092 = vmatpush.bf16.msra.mxu2 %v1373_v40 }
 0x1f8   : > { %v885_v44 = vsub.f32 1.5, %v884_v42  ;;  %v804_v45 = vpop.xlane.xlu2 %803 }
 0x1f9   : > { %v1476_v47 = vpop.eup %1475  ;;  %v815_v50 = vadd.f32 1e-06, %v811_v43  ;;  %v806_v53 = vmul.f32 %v804_v45, %v1810_v14 }
 0x1fa   : > { %v886_v54 = vmul.f32 %v1474_v32, %v885_v44  ;;  %v892_v55 = vmul.f32 %v1476_v47, %v880_v33  ;;  %vm898_vm10 = vweird.f32 %v1476_v47 }
 0x1fb   : > { %1477 = vrsqrt.f32 %v815_v50  ;;  %v810_v58 = vsub.f32 %v806_v53, %v808_v48  ;;  %vm899_vm12 = vmor %vm897_vm11, %vm898_vm10  ;;  %vm823_vm14 = vweird.f32 %v815_v50 }
 0x1fc   : > { %v890_v59 = vsel %vm889_vm9, %v1474_v32, %v886_v54  ;;  %v893_v61 = vmul.f32 %v1476_v47, %v892_v55  ;;  %v1361_v54 = vld [vmem:[#allocation5 + $0x8] sm:$0xff]  ;;  %v1360_v55 = vld [vmem:[#allocation5] sm:$0xff] }
 0x1fd   : > { %v812_v0 = vmax.f32 %v810_v58, 0.0  ;;  %v901_v1 = vmul.f32 %v890_v59, %v877_v56  ;;  %1015 = vmatpush.bf16.msra.mxu1 %v1361_v54  ;;  %v510_v56 = vsel %vm503_vm0, %v1903_v62, 0.0  ;;  %v1372_v58 = vld [vmem:[%s2005_s9 + $0x30] sm:$0xff]  ;;  %v525_v59 = vmul.f32 %v1903_v62, %v1903_v62 }
 0x1fe   : > { %v894_v2 = vmul.f32 0.5, %v893_v61  ;;  %511 = vadd.xlane.f32.xlu2 %v510_v56  ;;  %1093 = vmatpush.bf16.msra.mxu2 %v1372_v58  ;;  %v1371_v61 = vld [vmem:[%s2005_s9 + $0x28] sm:$0xff] }
 0x1ff   : > { %v816_v3 = vadd.f32 1e-06, %v812_v0  ;;  %v903_v8 = vmul.f32 %v1462_v63, %v901_v1  ;;  %v1370_v0 = vld [vmem:[%s2005_s9 + $0x20] sm:$0xff]  ;;  %v1369_v1 = vld [vmem:[%s2005_s9 + $0x18] sm:$0xff] }
 0x200   : > { %v895_v5 = vsub.f32 1.5, %v894_v2  ;;  %v1368_v2 = vld [vmem:[%s2005_s9 + $0x10] sm:$0xff] }
 0x201   : > { %v1478_v7 = vpop.eup %1477  ;;  %1479 = vrsqrt.f32 %v816_v3  ;;  %v905_v16 = vadd.f32 %v1463_v52, %v903_v8  ;;  %vm833_vm2 = vweird.f32 %v816_v3  ;;  %1016 = vmatpush.bf16.msra.mxu1 %v1360_v55 }
 0x202   : > { %v896_v10 = vmul.f32 %v1476_v47, %v895_v5  ;;  %v818_v11 = vmul.f32 %v1478_v7, %v815_v50  ;;  %vm824_vm13 = vweird.f32 %v1478_v7  ;;  %1094 = vmatpush.bf16.msra.mxu2 %v1371_v61 }
 0x203   : > { %v911_v24 = vpack.c.bf16 %v905_v16, %v905_v16  ;;  %vm825_vm15 = vmor %vm823_vm14, %vm824_vm13 }
 0x204   : > { %v900_v13 = vsel %vm899_vm12, %v1476_v47, %v896_v10  ;;  %v819_v15 = vmul.f32 %v1478_v7, %v818_v11 }
 0x205   : > { %v902_v6 = vmul.f32 %v900_v13, %v878_v12  ;;  %v934_v32 = vunpack.c.l.b16 %v911_v24  ;;  %v1367_v12 = vld [vmem:[%s2005_s9 + $0x8] sm:$0xff]  ;;  %v1366_v13 = vld [vmem:[%s2005_s9] sm:$0xff] }
 0x206   : > { %v820_v18 = vmul.f32 0.5, %v819_v15  ;;  %1095 = vmatpush.bf16.msra.mxu2 %v1370_v0 }
 0x207   : > { %v1480_v19 = vpop.eup %1479  ;;  %v904_v20 = vmul.f32 %v1462_v63, %v902_v6 }
 0x208   : > { %v821_v21 = vsub.f32 1.5, %v820_v18  ;;  %v828_v22 = vmul.f32 %v1480_v19, %v816_v3  ;;  %vm834_vm1 = vweird.f32 %v1480_v19  ;;  %v931_v3 = vpop.permute.xlu0 %930 }
 0x209   : > { %v906_v23 = vadd.f32 %v1463_v52, %v904_v20  ;;  %vm835_vm3 = vmor %vm833_vm2, %vm834_vm1  ;;  %v1375_v20 = vld [vmem:[%s2007_s11 + $0x8] sm:$0xff] }
 0x20a   : > { %v822_v27 = vmul.f32 %v1478_v7, %v821_v21  ;;  %v829_v49 = vmul.f32 %v1480_v19, %v828_v22  ;;  %1096 = vmatpush.bf16.msra.mxu2 %v1369_v1  ;;  %1135 = vmatpush.bf16.msra.mxu3 %v1375_v20 }
 0x20b   : > { %v912_v28 = vpack.c.bf16 %v906_v23, %v906_v23  ;;  %v1464_v23 = vld [vmem:[%s2004_s8] ss:$0 sm:$0xff] }
 0x20c   : > { %v826_v29 = vsel %vm825_vm15, %v1478_v7, %v822_v27  ;;  %v830_v30 = vmul.f32 0.5, %v829_v49 }
 0x20d   : > { %v837_v31 = vmul.f32 %v826_v29, %v813_v25  ;;  %v935_v33 = vunpack.c.l.b16 %v912_v28 }
 0x20e   : > { %v831_v35 = vsub.f32 1.5, %v830_v30  ;;  %1097 = vmatpush.bf16.msra.mxu2 %v1368_v2 }
 0x20f   : > { %v843_v36 = vmul.f32 %v1462_v63, %v837_v31  ;;  %v936_v37 = vpack.c.b16 %v935_v33, %v934_v32 }
 0x210   : > { %v832_v38 = vmul.f32 %v1480_v19, %v831_v35 }
 0x211   : > { %v849_v41 = vadd.f32 %v1463_v52, %v843_v36  ;;  %v937_v57 = vrot.slane %v936_v37, 7 }
 0x212   : > { %v836_v34 = vsel %vm835_vm3, %v1480_v19, %v832_v38  ;;  %1098 = vmatpush.bf16.msra.mxu2 %v1367_v12 }
 0x213   : > { %v838_v42 = vmul.f32 %v836_v34, %v814_v39  ;;  %938 = vrot.lane.b32.xlu1 %v937_v57, %s1638_s19  ;;  %v907_v45 = vpack.c.bf16 %v849_v41, %v849_v41  ;;  %v1374_v41 = vld [vmem:[%s2007_s11] sm:$0xff]  ;;  %s1557_s19 = sshra.s32 %s1168_s23, 4  ;;  %s1558_s19 = int_to_ptr.hbm [resolvable:$true] %s1557_s19 }
 0x214   : > { %1136 = vmatpush.bf16.msra.mxu3 %v1374_v41  ;;  %v1465_v57 = vld [vmem:[%s2006_s10] ss:$0 sm:$0xff]  ;;  %s1559_s15 = scalar_lea.hbm %s1558_s19, 8  ;;  %p1564_p5 = scmp.lt.s32.totalorder %s1558_s19, %s2009_s13 }
 0x215   : > { %v844_v43 = vmul.f32 %v1462_v63, %v838_v42  ;;  %v915_v48 = vunpack.c.l.b16 %v907_v45  ;;  %v532_v63 = vsel %vm503_vm0, %v525_v59, 0.0  ;;  %v1466_v45 = vld [vmem:[%s2008_s12] ss:$0 sm:$0xff]  ;;  %p1560_p1 = scmp.ne.s32.totalorder %s1558_s19, %s1559_s15  ;;  %p1565_p6 = scmp.lt.s32.totalorder %s1563_s14, %s1559_s15 }
 0x216   : > { %533 = vadd.xlane.f32.xlu2 %v532_v63  ;;  %1099 = vmatpush.bf16.msra.mxu2 %v1366_v13 }
 0x217   : > { %v850_v44 = vadd.f32 %v1463_v52, %v844_v43  ;;  %p1561_p2 = pnand %p1560_p1, %p1749_p4  ;;  %p1566_p7 = por %p1565_p6, %p1564_p5 }
 0x219   : > { %v908_v47 = vpack.c.bf16 %v850_v44, %v850_v44  ;;  %p1562_p3 = pneg %p1561_p2 }
 0x21b   : > { %v916_v50 = vunpack.c.l.b16 %v908_v47  ;;  %p1567_p9 = pnand %p1566_p7, %p1562_p3 }
 0x21d   : > { %v917_v53 = vpack.c.b16 %v916_v50, %v915_v48 }
 0x21f   : > { %v942_v4 = vsel %vm503_vm0, %v917_v53, %v931_v3 }
 0x271   : > { %v512_v15 = vpop.xlane.xlu2 %511 }
 0x272   : > { %v522_v6 = vmul.f32 %v1810_v14, %v512_v15 }
 0x274   : > { %v540_v16 = vmul.f32 %v522_v6, %v522_v6  ;;  %v549_v31 = vsub.f32 %v1903_v62, %v522_v6 }
 0x285   : > { %v939_v5 = vpop.permute.xlu1 %938 }
 0x286   : > { %v945_v7 = vsel %vm943_vm4, %v942_v4, %v939_v5 }
 0x287   : > { %v962_v52 = vshrl.u32 %v945_v7, 16  ;;  %v965_v8 = vshll.u32 %v945_v7, 16 }
 0x289   : > { %v964_v9 = vrot.slane %v962_v52, 2  ;;  %v967_v10 = vrot.slane %v965_v8, 3  ;;  %v534_v17 = vpop.xlane.xlu2 %533 }
 0x28a   : > { %v537_v18 = vmul.f32 %v534_v17, %v1810_v14 }
 0x28b   : > { %v968_v11 = vor.u32 %v967_v10, %v964_v9 }
 0x28c   : > { %v543_v19 = vsub.f32 %v537_v18, %v540_v16 }
 0x28d   : > { %1312 = vmatmul.msk.bf16.vlgmr.msra.gmra.mxu1 %vm1005_vm5, %v968_v11 }
 0x28e   : > { %v546_v21 = vmax.f32 %v543_v19, 0.0 }
 0x290   : > { %v552_v22 = vadd.f32 1e-06, %v546_v21 }
 0x292   : > { %1481 = vrsqrt.f32 %v552_v22  ;;  %vm579_vm6 = vweird.f32 %v552_v22 }
 0x298   : > { %v1482_v24 = vpop.eup %1481 }
 0x299   : > { %v574_v27 = vmul.f32 %v1482_v24, %v552_v22  ;;  %vm580_vm7 = vweird.f32 %v1482_v24 }
 0x29a   : > { %vm581_vm8 = vmor %vm579_vm6, %vm580_vm7 }
 0x29b   : > { %v575_v25 = vmul.f32 %v1482_v24, %v574_v27 }
 0x29d   : > { %v576_v14 = vmul.f32 0.5, %v575_v25 }
 0x29f   : > { %v577_v30 = vsub.f32 1.5, %v576_v14 }
 0x2a1   : > { %v578_v33 = vmul.f32 %v1482_v24, %v577_v30 }
 0x2a3   : > { %v582_v35 = vsel %vm581_vm8, %v1482_v24, %v578_v33 }
 0x2a4   : > { %v585_v36 = vmul.f32 %v582_v35, %v549_v31 }
 0x2a6   : > { %v592_v37 = vmul.f32 %v1822_v46, %v585_v36 }
 0x2a8   : > { %v599_v38 = vadd.f32 %v1829_v51, %v592_v37 }
 0x2aa   : > { %v601_v39 = vpack.c.bf16 %v599_v38, %v599_v38 }
 0x2ac   : > { %1287 = vmatmul.msk.bf16.gmra.mxu0 %vm503_vm0, %v601_v39 }
 0x30a   : > { %v1018_v26 = vpop.f32.mrf.mxu1 }
 0x30b   : > { %v1019_v49 = vadd.f32 %v1464_v23, %v1018_v26 }
 0x30d   : > { %v1022_v28 = vmax.f32 %v1019_v49, 0.0 }
 0x30f   : > { %v1023_v29 = vpack.c.bf16 %v1022_v28, %v1022_v28 }
 0x311   : > { %1100 = vmatmul.bf16.vlgmr.msra.gmra.mxu2 %v1023_v29 }
 0x312   : > { %v1020_v32 = vpop.f32.mrf.mxu1 }
 0x329   : > { %v642_v46 = vpop.f32.mrf.mxu0 }
 0x331   : > { %v644_v51 = vpop.f32.mrf.mxu0 }
 0x394   : > { %v1101_v34 = vpop.f32.mrf.mxu2 }
 0x395   : > { %v1102_v42 = vadd.f32 %v1465_v57, %v1101_v34 }
 0x397   : > { %v1105_v43 = vpack.c.bf16 %v1102_v42, %v1102_v42 }
 0x399   : > { %1353 = vmatmul.msk.bf16.vlgmr.msra.gmra.mxu3 %vm503_vm0, %v1105_v43 }
 0x39c   : > { %v1103_v44 = vpop.f32.mrf.mxu2 }
 0x41c   : > { %v1138_v47 = vpop.f32.mrf.mxu3 }
 0x41d   : > { %v1139_v48 = vadd.f32 %v1466_v45, %v1138_v47 }
 0x41f   : > { %v1149_v50 = vadd.f32 %v1835_v60, %v1139_v48 }
 0x421   : > { %1150 = vst.msk [vmem:[%s489_s20] sm:$0xff] %vm503_vm0, %v1149_v50 }
 0x422   : > { %1570 = shalt.err (!%p1567_p9)
}
 0x423   : > { %1385 = dma.vmem_to_hbm [thread:$0]  (%p1749_p4), %s1166_s22, 128, %s1168_s23, %s1152_s28  }
 0x424   : > { %v1140_v60 = vpop.f32.mrf.mxu3 }
 0x425 PF: > { %p1402_p10 = scmp.ge.s32.totalorder %s1629_s30, 2  ;;  %s1179_s16 = sand.u32 1, %s1609_s25  }
 0x426   : > { %s1180_s20 = scalar_lea.sflag [#allocation4], %s1179_s16 }
 0x427   : > { %p1395_p11 = pnand %p1402_p10, %p1756_p8 }
 0x429   : > { %p1396_p12 = pneg %p1395_p11 }
 0x42b   : > { %1604 = dma.done.wait (%p1396_p12), %s1180_s20, 128  }
 0x42c   : > { %1606 = vsyncadd (%p1396_p12), %s1180_s20, 4294967168  ;;  %s28_s30 = sadd.s32 1, %s1629_s30   ;;  %s2024_s19 = sld [smem:[#allocation11_spill]] }
 0x42d   : > { %p25_p13 = scmp.ge.s32.totalorder %s28_s30, 4   ;;  %s2025_s27 = sld [smem:[#allocation15_spill]] }
 0x42e   : > { %s2026_s28 = sld [smem:[#allocation12_spill]]  ;;  %s2028_s25 = smov %s1613_s26 }
 0x42f   : > { %s2027_s29 = sld [smem:[#allocation13_spill]]  ;;  %27 = sbr.rel (!%p25_p13) target bundleno = 6 (0x6), region = 116 }
 0x432   : > { %s2029_s26 = smov %s2024_s19 }
 0x434   :  { %1186 = vsyncpa [#allocation3], 1 }
 0x435   :  { %1188 = vsyncpa [#allocation3 + $0x1], 1 }
 0x436   :  { %1189 = vsyncpa [#allocation6], 1 }
 0x437   :  { %1190 = vsyncpa [#allocation4], 1 }
 0x438   :  { %1192 = vsyncpa [#allocation4 + $0x1], 1 }

// kernel: tpu_custom_call.1
= control target key start
LH: loop header
LB: loop body
LE: loop exit
PB: predicated region body
PF: predicated region fallthrough
CT: control target
= control target key end

     0   :  { %18 = vsyncpa [#allocation3], 0  ;;  %s1996_s0 = inlined_call_operand.vmem [shape: f32[2,1,24,32], index: 0, kind: input, shape index: {}]   ;;  %s1997_s1 = inlined_call_operand.hbm [shape: f32[1,32], index: 1, kind: input, shape index: {}]   ;;  %s1998_s2 = inlined_call_operand.vmem [shape: f32[1,32], index: 2, kind: input, shape index: {}]   ;;  %s1999_s3 = inlined_call_operand.vmem [shape: bf16[32,32], index: 3, kind: input, shape index: {}]   ;;  %s2000_s4 = inlined_call_operand.vmem [shape: f32[1,32], index: 4, kind: input, shape index: {}]   ;;  %s2001_s5 = inlined_call_operand.vmem [shape: f32[1,32], index: 5, kind: input, shape index: {}]   ;;  %s2002_s6 = inlined_call_operand.vmem [shape: f32[1,32], index: 6, kind: input, shape index: {}]   ;;  %s2003_s7 = inlined_call_operand.hbm [shape: bf16[96,128], index: 7, kind: input, shape index: {}]   ;;  %s2004_s8 = inlined_call_operand.vmem [shape: f32[1,128], index: 8, kind: input, shape index: {}]   ;;  %s2005_s9 = inlined_call_operand.vmem [shape: bf16[128,32], index: 9, kind: input, shape index: {}]   ;;  %s2006_s10 = inlined_call_operand.vmem [shape: f32[1,32], index: 10, kind: input, shape index: {}]   ;;  %s2007_s11 = inlined_call_operand.vmem [shape: bf16[32,32], index: 11, kind: input, shape index: {}]   ;;  %s2008_s12 = inlined_call_operand.vmem [shape: f32[1,32], index: 12, kind: input, shape index: {}]   ;;  %s2009_s13 = inlined_call_operand.hbm [shape: f32[2,8,32], index: 13, kind: output, shape index: {}]  }
   0x1   :  { %19 = vsyncpa [#allocation6], 0 }
   0x2   :  { %20 = vsyncpa [#allocation4], 0 }
   0x3   :  { %22 = vsyncpa [#allocation4 + $0x1], 0  ;;  %s1709_s25 = smov 0   ;;  %s1711_s26 = smov 0  }
   0x4   :  { %s1713_s27 = smov 0   ;;  %s1715_s28 = smov 0  }
   0x5   :  { %s1717_s29 = smov 0   ;;  %s1719_s30 = smov 0  }
   0x6 LB: > { %2014 = sst [smem:[#allocation11_spill]] %s1617_s27  ;;  %s1267_s14 = sadd.s32 4294967295, %s1629_s30   ;;  %s1629_s30 = sphi %s1719_s30, %s28_s30   ;;  %s1625_s29 = sphi %s1717_s29, %s2027_s29   ;;  %s1621_s28 = sphi %s1715_s28, %s2026_s28   ;;  %s1617_s27 = sphi %s1713_s27, %s2025_s27   ;;  %s1613_s26 = sphi %s1711_s26, %s2029_s26   ;;  %s1609_s25 = sphi %s1709_s25, %s2028_s25  }
   0x7   : > { %2015 = sst [smem:[#allocation12_spill]] %s1625_s29  ;;  %s1268_s15 = sadd.s32 4294967294, %s1629_s30  }
   0x8   : > { %s40_s16 = sadd.s32 1, %s1625_s29  ;;  %s329_s17 = sadd.s32 1, %s1617_s27 }
   0x9   : > { %p42_p0 = scmp.ge.s32.totalorder %s40_s16, 2  ;;  %p339_p1 = scmp.ne.s32.totalorder %s1617_s27, %s1613_s26 }
   0xa   : > { %p340_p2 = scmp.eq.s32.totalorder %s1267_s14, 1  ;;  %p345_p3 = scmp.ne.s32.totalorder %s1613_s26, %s1609_s25 }
   0xb   : > { %s2031_s16 = smov (%p42_p0, %s40_s16), 0  ;;  %p346_p5 = scmp.eq.s32.totalorder %s1268_s15, 1 }
   0xc   : > { %2016 = sst [smem:[#allocation13_spill]] %s2031_s16  ;;  %p1749_p4 = por %p340_p2, %p339_p1 }
   0xd   : > { %s324_s19 = ssub.s32 %s1625_s29, %s2031_s16  ;;  %p1269_p6 = scmp.ge.s32.totalorder %s1629_s30, 1 }
   0xe   : > { %p327_p7 = scmp.eq.s32.totalorder %s324_s19, 0  ;;  %p1756_p8 = por %p346_p5, %p345_p3 }
   0xf   : > { %p353_p9 = scmp.lt.s32.totalorder %s1629_s30, 3  ;;  %p1768_p11 = scmp.eq.s32.totalorder %s1267_s14, 0 }
  0x10   : > { %s2018_s20 = scalar_select %p1756_p8, 1, 0 }
  0x11   : > { %s1762_s21 = scalar_select %p327_p7, %s1617_s27, %s329_s17  }
  0x12   : > { %2019 = sst [smem:[#allocation14_spill]] %s2018_s20  ;;  %p1764_p10 = pnand %p1269_p6, %p353_p9 }
  0x13   : > { %2020 = sst [smem:[#allocation15_spill]] %s1762_s21  ;;  %s365_s19 = sshll.u32 %s1997_s1, 4  ;;  %s366_s19 = int_to_ptr.hbm [resolvable:$true] %s365_s19 }
  0x14   : > { %p1387_p12 = pneg %p1764_p10  ;;  %s1631_s16 = smov [#allocation2]  }
  0x15   : > { %s367_s17 = sshll.u32 %s1631_s16, 4  ;;  %s391_s27 = sshll.u32 %s2003_s7, 4  ;;  %s368_s17 = int_to_ptr.vmem [resolvable:$true] %s367_s17  ;;  %s392_s27 = int_to_ptr.hbm [resolvable:$true] %s391_s27 }
  0x16   : > { %p1388_p13 = pnand %p1768_p11, %p1387_p12  ;;  %s1632_s14 = smov [#allocation5]  }
  0x17   : > { %s393_s20 = sshll.u32 %s1632_s14, 4  ;;  %s1633_s24 = smov 64   ;;  %s394_s20 = int_to_ptr.vmem [resolvable:$true] %s393_s20 }
  0x18   : > { %1390 = dma.hbm_to_vmem [thread:$0]  (!%p1388_p13), %s366_s19, 16, %s368_s17, [#allocation3]  }
  0x19   : > { %s1634_s15 = smov 4   ;;  %436 = sbr.rel (%p1764_p10) target bundleno = 1061 (0x425), region = 72 }
  0x1a   : > { %1393 = dma.hbm_to_vmem [thread:$0]  (!%p1388_p13), %s392_s27, 768, %s394_s20, [#allocation6], %s1633_s24, %s1633_s24, %s1634_s15  }
  0x1e   : > { %1596 = dma.done.wait (%p1768_p11), [#allocation3], 16  }
  0x1f   : > { %1598 = vsyncadd (%p1768_p11), [#allocation3], 4294967280 }
  0x20   : > { %1600 = dma.done.wait (%p1768_p11), [#allocation6], 768  }
  0x21   : > { %1602 = vsyncadd (%p1768_p11), [#allocation6], 4294966528  ;;  %p490_p0 = scmp.lt.s32.totalorder %s1621_s28, 1  ;;  %vm503_vm0 = vcmask 261120   ;;  %v1635_v8 = vmov 32.0   ;;  %v1359_v20 = vld [vmem:[%s1999_s3 + $0x8] sm:$0xff]  ;;  %v646_v61 = vlaneseq }
  0x22   : > { %1467 = vrcp.f32 %v1635_v8  ;;  %634 = vmatpush.bf16.msra.mxu0 %v1359_v20  ;;  %v1358_v22 = vld [vmem:[%s1999_s3] sm:$0xff]  ;;  %vm1144_vm8 = vcmask 1041408   ;;  %s1638_s19 = smov 64   ;;  %s487_s17 = sand.u32 1, %s1613_s26  }
  0x23   : > { %s491_s29 = scalar_select %p490_p0, %s1621_s28, 1  ;;  %v1822_v46 = vld [vmem:[#allocation2] ss:$0 sm:$0xff]  ;;  %v647_v62 = vshrl.u32 %v646_v61, 7 }
  0x24   : > { %v1829_v51 = vld [vmem:[%s1998_s2] ss:$0 sm:$0xff]  ;;  %s1276_s14 = sshll.u32 %s487_s17, 3  ;;  %s1355_s24 = sshll.u32 %s1621_s28, 3 }
  0x25   : > { %s1376_s27 = smul.u32 24, %s491_s29  ;;  %v653_v63 = vadd.s32 4294967290, %v647_v62  ;;  %vm680_vm10 = vcmp.lt.s32.totalorder %v647_v62, 1  ;;  %vm674_vm11 = vcmp.ge.s32.totalorder %v647_v62, 1  ;;  %vm702_vm13 = vcmp.lt.s32.totalorder %v647_v62, 2  ;;  %s1163_s16 = scalar_lea.hbm %s2009_s13, %s1355_s24 }
  0x26   : > { %635 = vmatpush.bf16.msra.mxu0 %v1358_v22  ;;  %vm696_vm14 = vcmp.ge.s32.totalorder %v647_v62, 2  ;;  %vm724_vm15 = vcmp.lt.s32.totalorder %v647_v62, 4  ;;  %s489_s20 = scalar_lea.vmem [#allocation7], %s1276_s14  ;;  %s1167_s23 = sshll.u32 %s1163_s16, 4  ;;  %s1168_s23 = int_to_ptr.hbm [resolvable:$true] %s1167_s23 }
  0x27   : > { %s1797_s21 = scalar_lea.vmem %s1996_s0, %s1376_s27  ;;  %vm656_vm9 = vcmp.ge.s32.totalorder %v653_v63, 0  ;;  %s1637_s27 = smov 32  }
  0x28   : > { %v500_v0 = vld [vmem:[%s1797_s21] sm:$0xff]  ;;  %v1802_v3 = vld [vmem:[%s1797_s21 + $0x8] sm:$0xff]  ;;  %v1468_v9 = vpop.eup %1467  ;;  %s1165_s22 = sshll.u32 %s489_s20, 4  ;;  %s1152_s28 = scalar_lea.sflag [#allocation4], %s487_s17  ;;  %s1166_s22 = int_to_ptr.vmem [resolvable:$true] %s1165_s22 }
  0x29   : > { %v504_v1 = vsel %vm503_vm0, %v500_v0, 0.0  ;;  %v523_v2 = vmul.f32 %v500_v0, %v500_v0  ;;  %v524_v5 = vmul.f32 %v1802_v3, %v1802_v3  ;;  %v507_v6 = vsel %vm503_vm0, %v1802_v3, 0.0  ;;  %s1563_s14 = scalar_lea.hbm %s2009_s13, 16 }
  0x2a   : > { %505 = vadd.xlane.f32.xlu0 %v504_v1  ;;  %v514_v10 = vmul.f32 32.0, %v1468_v9  ;;  %vm518_vm1 = vweird.f32 %v1468_v9 }
  0x2b   : > { %v526_v4 = vsel %vm503_vm0, %v523_v2, 0.0  ;;  %v529_v7 = vsel %vm503_vm0, %v524_v5, 0.0  ;;  %v648_v2 = vadd.s32 8, %v647_v62 }
  0x2c   : > { %527 = vadd.xlane.f32.xlu1 %v526_v4  ;;  %v515_v11 = vsub.f32 1.0, %v514_v10  ;;  %v1636_v4 = vmov 0.0  }
  0x2d   : > { %v679_v5 = vrot.slane %v1636_v4, 7  ;;  %v654_v8 = vadd.s32 4294967290, %v648_v2 }
  0x2e   : > { %v516_v12 = vmul.f32 %v1468_v9, %v515_v11 }
  0x2f   : > { %vm660_vm12 = vcmp.lt.s32.totalorder %v654_v8, 8 }
  0x30   : > { %v517_v13 = vadd.f32 %v1468_v9, %v516_v12 }
  0x32   : > { %508 = vadd.xlane.f32.xlu0 %v507_v6  ;;  %v1810_v14 = vsel %vm518_vm1, %v1468_v9, %v517_v13  ;;  %vm718_vm1 = vcmp.ge.s32.totalorder %v647_v62, 4 }
  0x34   : > { %530 = vadd.xlane.f32.xlu1 %v529_v7 }
  0x9d   : > { %v506_v15 = vpop.xlane.xlu0 %505 }
  0x9e   : > { %v520_v16 = vmul.f32 %v1810_v14, %v506_v15 }
  0x9f   : > { %v528_v17 = vpop.xlane.xlu1 %527 }
  0xa0   : > { %v538_v18 = vmul.f32 %v520_v16, %v520_v16  ;;  %v535_v19 = vmul.f32 %v528_v17, %v1810_v14  ;;  %v547_v43 = vsub.f32 %v500_v0, %v520_v16  ;;  %v1461_v0 = vld [vmem:[%s2000_s4] ss:$0 sm:$0xff] }
  0xa2   : > { %v541_v21 = vsub.f32 %v535_v19, %v538_v18 }
  0xa4   : > { %v544_v23 = vmax.f32 %v541_v21, 0.0 }
  0xa5   : > { %v509_v24 = vpop.xlane.xlu0 %508 }
  0xa6   : > { %v550_v25 = vadd.f32 1e-06, %v544_v23  ;;  %v521_v26 = vmul.f32 %v1810_v14, %v509_v24 }
  0xa7   : > { %v531_v27 = vpop.xlane.xlu1 %530 }
  0xa8   : > { %1469 = vrsqrt.f32 %v550_v25  ;;  %v539_v28 = vmul.f32 %v521_v26, %v521_v26  ;;  %v536_v29 = vmul.f32 %v531_v27, %v1810_v14  ;;  %vm559_vm3 = vweird.f32 %v550_v25 }
  0xa9   : > { %v548_v49 = vsub.f32 %v1802_v3, %v521_v26 }
  0xaa   : > { %v542_v30 = vsub.f32 %v536_v29, %v539_v28 }
  0xac   : > { %v545_v31 = vmax.f32 %v542_v30, 0.0 }
  0xae   : > { %v1470_v32 = vpop.eup %1469  ;;  %v551_v34 = vadd.f32 1e-06, %v545_v31 }
  0xaf   : > { %v554_v33 = vmul.f32 %v1470_v32, %v550_v25  ;;  %vm560_vm2 = vweird.f32 %v1470_v32 }
  0xb0   : > { %1471 = vrsqrt.f32 %v551_v34  ;;  %vm561_vm4 = vmor %vm559_vm3, %vm560_vm2  ;;  %vm569_vm6 = vweird.f32 %v551_v34  ;;  %vm778_vm2 = vcmask 1044480   ;;  %vm851_vm3 = vcmask 261123  }
  0xb1   : > { %v555_v35 = vmul.f32 %v1470_v32, %v554_v33 }
  0xb3   : > { %v556_v36 = vmul.f32 0.5, %v555_v35 }
  0xb5   : > { %v557_v37 = vsub.f32 1.5, %v556_v36 }
  0xb6   : > { %v1472_v38 = vpop.eup %1471 }
  0xb7   : > { %v558_v39 = vmul.f32 %v1470_v32, %v557_v37  ;;  %v564_v40 = vmul.f32 %v1472_v38, %v551_v34  ;;  %vm570_vm5 = vweird.f32 %v1472_v38 }
  0xb8   : > { %vm571_vm7 = vmor %vm569_vm6, %vm570_vm5  ;;  %vm791_vm5 = vcmask 258048   ;;  %vm787_vm6 = vcmask 261125  }
  0xb9   : > { %v565_v41 = vmul.f32 %v1472_v38, %v564_v40  ;;  %v562_v42 = vsel %vm561_vm4, %v1470_v32, %v558_v39  ;;  %vm855_vm4 = vcmask 256000  }
  0xba   : > { %v583_v45 = vmul.f32 %v562_v42, %v547_v43 }
  0xbb   : > { %v566_v44 = vmul.f32 0.5, %v565_v41 }
  0xbc   : > { %v590_v50 = vmul.f32 %v1822_v46, %v583_v45 }
  0xbd   : > { %v567_v47 = vsub.f32 1.5, %v566_v44 }
  0xbe   : > { %v597_v55 = vadd.f32 %v1829_v51, %v590_v50 }
  0xbf   : > { %v568_v48 = vmul.f32 %v1472_v38, %v567_v47 }
  0xc0   : > { %v1145_v58 = vrot.slane %v597_v55, 6 }
  0xc1   : > { %v572_v52 = vsel %vm571_vm7, %v1472_v38, %v568_v48 }
  0xc2   : > { %v584_v53 = vmul.f32 %v572_v52, %v548_v49 }
  0xc4   : > { %v591_v54 = vmul.f32 %v1822_v46, %v584_v53 }
  0xc6   : > { %v598_v56 = vadd.f32 %v1829_v51, %v591_v54 }
  0xc8   : > { %v600_v57 = vpack.c.bf16 %v598_v56, %v597_v55  ;;  %v1146_v59 = vrot.slane %v598_v56, 6 }
  0xca   : > { %1286 = vmatmul.msk.bf16.vlgmr.msra.gmra.mxu0 %vm503_vm0, %v600_v57  ;;  %v1835_v60 = vsel %vm1144_vm8, %v1145_v58, %v1146_v59 }
 0x147   : > { %v637_v1 = vpop.f32.mrf.mxu0 }
 0x148   : > { %v638_v3 = vadd.f32 %v1461_v0, %v637_v1 }
 0x14a   : > { %v1840_v6 = vsel %vm656_vm9, %v638_v3, 0.0 }
 0x14b   : > { %v677_v7 = vrot.slane %v1840_v6, 7  ;;  %v909_v3 = vpack.c.bf16 %v1840_v6, %v1840_v6 }
 0x14d   : > { %v683_v9 = vsel %vm680_vm10, %v679_v5, %v677_v7 }
 0x14e   : > { %v690_v10 = vsel %vm674_vm11, %v683_v9, 0.0 }
 0x14f   : > { %v639_v11 = vpop.f32.mrf.mxu0  ;;  %v693_v13 = vadd.f32 %v690_v10, %v1840_v6 }
 0x150   : > { %v640_v12 = vadd.f32 %v1461_v0, %v639_v11 }
 0x151   : > { %v699_v19 = vrot.slane %v693_v13, 6 }
 0x152   : > { %v1844_v15 = vsel %vm660_vm12, %v640_v12, 0.0 }
 0x153   : > { %v678_v16 = vrot.slane %v1844_v15, 7  ;;  %v910_v0 = vpack.c.bf16 %v1844_v15, %v1844_v15 }
 0x155   : > { %v681_v17 = vsel %vm680_vm10, %v678_v16, %v679_v5  ;;  %v682_v18 = vsel %vm680_vm10, %v677_v7, %v678_v16  ;;  %v921_v4 = vunpack.c.l.b16 %v910_v0  ;;  %v920_v5 = vunpack.c.l.b16 %v909_v3 }
 0x156   : > { %v694_v20 = vadd.f32 %v682_v18, %v1844_v15  ;;  %v701_v21 = vrot.slane %v681_v17, 6 }
 0x157   : > { %v922_v8 = vpack.c.b16 %v921_v4, %v920_v5  ;;  %v1365_v4 = vld [vmem:[#allocation5 + $0x28] sm:$0xff] }
 0x158   : > { %v700_v22 = vrot.slane %v694_v20, 6  ;;  %v705_v23 = vsel %vm702_vm13, %v701_v21, %v699_v19  ;;  %1011 = vmatpush.bf16.msra.mxu1 %v1365_v4 }
 0x159   : > { %v712_v24 = vsel %vm696_vm14, %v705_v23, 0.0  ;;  %v926_v10 = vshll.u32 %v922_v8, 16 }
 0x15a   : > { %v703_v25 = vsel %vm702_vm13, %v700_v22, %v701_v21  ;;  %v704_v26 = vsel %vm702_vm13, %v699_v19, %v700_v22  ;;  %v715_v27 = vadd.f32 %v712_v24, %v693_v13  ;;  %v924_v13 = vshrl.u32 %v922_v8, 16 }
 0x15b   : > { %v716_v28 = vadd.f32 %v704_v26, %v694_v20  ;;  %v717_v29 = vadd.f32 %v703_v25, %v681_v17  ;;  %v928_v12 = vrot.slane %v926_v10, 1 }
 0x15c   : > { %v721_v30 = vrot.slane %v715_v27, 4 }
 0x15d   : > { %v722_v31 = vrot.slane %v716_v28, 4  ;;  %v723_v32 = vrot.slane %v717_v29, 4  ;;  %v929_v15 = vor.u32 %v928_v12, %v924_v13 }
 0x15f   : > { %v725_v33 = vsel %vm724_vm15, %v722_v31, %v723_v32  ;;  %v726_v34 = vsel %vm724_vm15, %v721_v30, %v722_v31  ;;  %v727_v35 = vsel %vm724_vm15, %v723_v32, %v721_v30 }
 0x160   : > { %v734_v36 = vsel %vm718_vm1, %v727_v35, 0.0  ;;  %v738_v37 = vadd.f32 %v726_v34, %v716_v28  ;;  %v739_v38 = vadd.f32 %v725_v33, %v717_v29 }
 0x161   : > { %v737_v39 = vadd.f32 %v734_v36, %v715_v27 }
 0x162   : > { %v754_v40 = vadd.f32 %v739_v38, %v738_v37 }
 0x163   : > { %v753_v41 = vadd.f32 %v738_v37, %v737_v39  ;;  %v771_v43 = vrot.slane %v737_v39, 3 }
 0x164   : > { %v769_v42 = vadd.f32 %v754_v40, %v737_v39 }
 0x165   : > { %v779_v44 = vrot.slane %v753_v41, 3  ;;  %v773_v50 = vsub.f32 %v737_v39, %v771_v43  ;;  %v774_v59 = vsub.f32 %v753_v41, %v771_v43 }
 0x167   : > { %v780_v45 = vsel %vm778_vm2, %v771_v43, %v779_v44  ;;  %v784_v47 = vsub.f32 %v769_v42, %v779_v44  ;;  %v1857_v57 = vmul.f32 0.2, %v773_v50  ;;  %v1861_v62 = vmul.f32 0.2, %v774_v59 }
 0x168   : > { %v783_v48 = vsub.f32 %v753_v41, %v780_v45 }
 0x169   : > { %v1848_v49 = vmul.f32 0.2, %v784_v47  ;;  %v797_v61 = vmul.f32 %v1857_v57, %v1857_v57  ;;  %v792_v2 = vsel %vm791_vm5, %v1861_v62, 0.0  ;;  %v788_v7 = vsel %vm787_vm6, %v1857_v57, 0.0 }
 0x16a   : > { %v1850_v52 = vmul.f32 0.2, %v783_v48  ;;  %v798_v9 = vmul.f32 %v1861_v62, %v1861_v62 }
 0x16b   : > { %v862_v53 = vmul.f32 %v1848_v49, %v1848_v49  ;;  %v856_v63 = vsel %vm855_vm4, %v1848_v49, 0.0  ;;  %v799_v1 = vsel %vm787_vm6, %v797_v61, 0.0 }
 0x16c   : > { %v852_v54 = vsel %vm851_vm3, %v1850_v52, 0.0  ;;  %v861_v55 = vmul.f32 %v1850_v52, %v1850_v52  ;;  %v802_v11 = vsel %vm791_vm5, %v798_v9, 0.0  ;;  %v1364_v9 = vld [vmem:[#allocation5 + $0x20] sm:$0xff]  ;;  %vm1005_vm5 = vcmask 785408  }
 0x16d   : > { %853 = vadd.xlane.f32.xlu2 %v852_v54  ;;  %v866_v56 = vsel %vm855_vm4, %v862_v53, 0.0  ;;  %1012 = vmatpush.bf16.msra.mxu1 %v1364_v9  ;;  %vm943_vm4 = vcmask 523264  }
 0x16e   : > { %867 = vadd.xlane.f32.xlu1 %v866_v56  ;;  %v863_v58 = vsel %vm851_vm3, %v861_v55, 0.0 }
 0x16f   : > { %864 = vadd.xlane.f32.xlu0 %v863_v58 }
 0x175   : > { %857 = vadd.xlane.f32.xlu2 %v856_v63  ;;  %v1462_v63 = vld [vmem:[%s2001_s5] ss:$0 sm:$0xff] }
 0x176   : > { %800 = vadd.xlane.f32.xlu1 %v799_v1 }
 0x177   : > { %793 = vadd.xlane.f32.xlu0 %v792_v2 }
 0x17d   : > { %789 = vadd.xlane.f32.xlu2 %v788_v7 }
 0x185   : > { %803 = vadd.xlane.f32.xlu2 %v802_v11 }
 0x18b   : > { %930 = vrot.lane.b32.xlu0 %v929_v15, %s1637_s27 }
 0x1e0   : > { %v854_v6 = vpop.xlane.xlu2 %853 }
 0x1e1   : > { %v859_v16 = vmul.f32 %v854_v6, %v1810_v14  ;;  %v868_v21 = vpop.xlane.xlu1 %867 }
 0x1e2   : > { %v865_v17 = vpop.xlane.xlu0 %864  ;;  %v870_v26 = vmul.f32 %v868_v21, %v1810_v14 }
 0x1e3   : > { %v871_v18 = vmul.f32 %v859_v16, %v859_v16  ;;  %v869_v19 = vmul.f32 %v865_v17, %v1810_v14  ;;  %v877_v56 = vsub.f32 %v1850_v52, %v859_v16  ;;  %v1463_v52 = vld [vmem:[%s2002_s6] ss:$0 sm:$0xff] }
 0x1e4   : > { %v1363_v17 = vld [vmem:[#allocation5 + $0x18] sm:$0xff] }
 0x1e5   : > { %v873_v20 = vsub.f32 %v869_v19, %v871_v18  ;;  %1013 = vmatpush.bf16.msra.mxu1 %v1363_v17 }
 0x1e7   : > { %v875_v22 = vmax.f32 %v873_v20, 0.0 }
 0x1e8   : > { %v858_v23 = vpop.xlane.xlu2 %857 }
 0x1e9   : > { %v879_v24 = vadd.f32 1e-06, %v875_v22  ;;  %v860_v25 = vmul.f32 %v858_v23, %v1810_v14  ;;  %v801_v30 = vpop.xlane.xlu1 %800 }
 0x1ea   : > { %v794_v36 = vpop.xlane.xlu0 %793  ;;  %v805_v37 = vmul.f32 %v801_v30, %v1810_v14 }
 0x1eb   : > { %1473 = vrsqrt.f32 %v879_v24  ;;  %v872_v27 = vmul.f32 %v860_v25, %v860_v25  ;;  %v1885_v40 = vmul.f32 %v794_v36, %v1810_v14  ;;  %vm887_vm8 = vweird.f32 %v879_v24 }
 0x1ec   : > { %v878_v12 = vsub.f32 %v1848_v49, %v860_v25 }
 0x1ed   : > { %v874_v28 = vsub.f32 %v870_v26, %v872_v27  ;;  %v808_v48 = vmul.f32 %v1885_v40, %v1885_v40  ;;  %v1362_v26 = vld [vmem:[#allocation5 + $0x10] sm:$0xff] }
 0x1ee   : > { %1014 = vmatpush.bf16.msra.mxu1 %v1362_v26 }
 0x1ef   : > { %v876_v29 = vmax.f32 %v874_v28, 0.0 }
 0x1f0   : > { %v790_v31 = vpop.xlane.xlu2 %789 }
 0x1f1   : > { %v1474_v32 = vpop.eup %1473  ;;  %v880_v33 = vadd.f32 1e-06, %v876_v29  ;;  %v1879_v34 = vmul.f32 %v790_v31, %v1810_v14 }
 0x1f2   : > { %v882_v35 = vmul.f32 %v1474_v32, %v879_v24  ;;  %vm888_vm7 = vweird.f32 %v1474_v32 }
 0x1f3   : > { %1475 = vrsqrt.f32 %v880_v33  ;;  %v807_v38 = vmul.f32 %v1879_v34, %v1879_v34  ;;  %vm889_vm9 = vmor %vm887_vm8, %vm888_vm7  ;;  %vm897_vm11 = vweird.f32 %v880_v33  ;;  %v813_v25 = vsub.f32 %v1857_v57, %v1879_v34 }
 0x1f4   : > { %v883_v39 = vmul.f32 %v1474_v32, %v882_v35 }
 0x1f5   : > { %v809_v41 = vsub.f32 %v805_v37, %v807_v38 }
 0x1f6   : > { %v884_v42 = vmul.f32 0.5, %v883_v39  ;;  %v814_v39 = vsub.f32 %v1861_v62, %v1885_v40  ;;  %v1903_v62 = vld [vmem:[%s1797_s21 + $0x10] sm:$0xff]  ;;  %v1373_v40 = vld [vmem:[%s2005_s9 + $0x38] sm:$0xff] }
 0x1f7   : > { %v811_v43 = vmax.f32 %v809_v41, 0.0  ;;  %1092 = vmatpush.bf16.msra.mxu2 %v1373_v40 }
 0x1f8   : > { %v885_v44 = vsub.f32 1.5, %v884_v42  ;;  %v804_v45 = vpop.xlane.xlu2 %803 }
 0x1f9   : > { %v1476_v47 = vpop.eup %1475  ;;  %v815_v50 = vadd.f32 1e-06, %v811_v43  ;;  %v806_v53 = vmul.f32 %v804_v45, %v1810_v14 }
 0x1fa   : > { %v886_v54 = vmul.f32 %v1474_v32, %v885_v44  ;;  %v892_v55 = vmul.f32 %v1476_v47, %v880_v33  ;;  %vm898_vm10 = vweird.f32 %v1476_v47 }
 0x1fb   : > { %1477 = vrsqrt.f32 %v815_v50  ;;  %v810_v58 = vsub.f32 %v806_v53, %v808_v48  ;;  %vm899_vm12 = vmor %vm897_vm11, %vm898_vm10  ;;  %vm823_vm14 = vweird.f32 %v815_v50 }
 0x1fc   : > { %v890_v59 = vsel %vm889_vm9, %v1474_v32, %v886_v54  ;;  %v893_v61 = vmul.f32 %v1476_v47, %v892_v55  ;;  %v1361_v54 = vld [vmem:[#allocation5 + $0x8] sm:$0xff]  ;;  %v1360_v55 = vld [vmem:[#allocation5] sm:$0xff] }
 0x1fd   : > { %v812_v0 = vmax.f32 %v810_v58, 0.0  ;;  %v901_v1 = vmul.f32 %v890_v59, %v877_v56  ;;  %1015 = vmatpush.bf16.msra.mxu1 %v1361_v54  ;;  %v510_v56 = vsel %vm503_vm0, %v1903_v62, 0.0  ;;  %v1372_v58 = vld [vmem:[%s2005_s9 + $0x30] sm:$0xff]  ;;  %v525_v59 = vmul.f32 %v1903_v62, %v1903_v62 }
 0x1fe   : > { %v894_v2 = vmul.f32 0.5, %v893_v61  ;;  %511 = vadd.xlane.f32.xlu2 %v510_v56  ;;  %1093 = vmatpush.bf16.msra.mxu2 %v1372_v58  ;;  %v1371_v61 = vld [vmem:[%s2005_s9 + $0x28] sm:$0xff] }
 0x1ff   : > { %v816_v3 = vadd.f32 1e-06, %v812_v0  ;;  %v903_v8 = vmul.f32 %v1462_v63, %v901_v1  ;;  %v1370_v0 = vld [vmem:[%s2005_s9 + $0x20] sm:$0xff]  ;;  %v1369_v1 = vld [vmem:[%s2005_s9 + $0x18] sm:$0xff] }
 0x200   : > { %v895_v5 = vsub.f32 1.5, %v894_v2  ;;  %v1368_v2 = vld [vmem:[%s2005_s9 + $0x10] sm:$0xff] }
 0x201   : > { %v1478_v7 = vpop.eup %1477  ;;  %1479 = vrsqrt.f32 %v816_v3  ;;  %v905_v16 = vadd.f32 %v1463_v52, %v903_v8  ;;  %vm833_vm2 = vweird.f32 %v816_v3  ;;  %1016 = vmatpush.bf16.msra.mxu1 %v1360_v55 }
 0x202   : > { %v896_v10 = vmul.f32 %v1476_v47, %v895_v5  ;;  %v818_v11 = vmul.f32 %v1478_v7, %v815_v50  ;;  %vm824_vm13 = vweird.f32 %v1478_v7  ;;  %1094 = vmatpush.bf16.msra.mxu2 %v1371_v61 }
 0x203   : > { %v911_v24 = vpack.c.bf16 %v905_v16, %v905_v16  ;;  %vm825_vm15 = vmor %vm823_vm14, %vm824_vm13 }
 0x204   : > { %v900_v13 = vsel %vm899_vm12, %v1476_v47, %v896_v10  ;;  %v819_v15 = vmul.f32 %v1478_v7, %v818_v11 }
 0x205   : > { %v902_v6 = vmul.f32 %v900_v13, %v878_v12  ;;  %v934_v32 = vunpack.c.l.b16 %v911_v24  ;;  %v1367_v12 = vld [vmem:[%s2005_s9 + $0x8] sm:$0xff]  ;;  %v1366_v13 = vld [vmem:[%s2005_s9] sm:$0xff] }
 0x206   : > { %v820_v18 = vmul.f32 0.5, %v819_v15  ;;  %1095 = vmatpush.bf16.msra.mxu2 %v1370_v0 }
 0x207   : > { %v1480_v19 = vpop.eup %1479  ;;  %v904_v20 = vmul.f32 %v1462_v63, %v902_v6 }
 0x208   : > { %v821_v21 = vsub.f32 1.5, %v820_v18  ;;  %v828_v22 = vmul.f32 %v1480_v19, %v816_v3  ;;  %vm834_vm1 = vweird.f32 %v1480_v19  ;;  %v931_v3 = vpop.permute.xlu0 %930 }
 0x209   : > { %v906_v23 = vadd.f32 %v1463_v52, %v904_v20  ;;  %vm835_vm3 = vmor %vm833_vm2, %vm834_vm1  ;;  %v1375_v20 = vld [vmem:[%s2007_s11 + $0x8] sm:$0xff] }
 0x20a   : > { %v822_v27 = vmul.f32 %v1478_v7, %v821_v21  ;;  %v829_v49 = vmul.f32 %v1480_v19, %v828_v22  ;;  %1096 = vmatpush.bf16.msra.mxu2 %v1369_v1  ;;  %1135 = vmatpush.bf16.msra.mxu3 %v1375_v20 }
 0x20b   : > { %v912_v28 = vpack.c.bf16 %v906_v23, %v906_v23  ;;  %v1464_v23 = vld [vmem:[%s2004_s8] ss:$0 sm:$0xff] }
 0x20c   : > { %v826_v29 = vsel %vm825_vm15, %v1478_v7, %v822_v27  ;;  %v830_v30 = vmul.f32 0.5, %v829_v49 }
 0x20d   : > { %v837_v31 = vmul.f32 %v826_v29, %v813_v25  ;;  %v935_v33 = vunpack.c.l.b16 %v912_v28 }
 0x20e   : > { %v831_v35 = vsub.f32 1.5, %v830_v30  ;;  %1097 = vmatpush.bf16.msra.mxu2 %v1368_v2 }
 0x20f   : > { %v843_v36 = vmul.f32 %v1462_v63, %v837_v31  ;;  %v936_v37 = vpack.c.b16 %v935_v33, %v934_v32 }
 0x210   : > { %v832_v38 = vmul.f32 %v1480_v19, %v831_v35 }
 0x211   : > { %v849_v41 = vadd.f32 %v1463_v52, %v843_v36  ;;  %v937_v57 = vrot.slane %v936_v37, 7 }
 0x212   : > { %v836_v34 = vsel %vm835_vm3, %v1480_v19, %v832_v38  ;;  %1098 = vmatpush.bf16.msra.mxu2 %v1367_v12 }
 0x213   : > { %v838_v42 = vmul.f32 %v836_v34, %v814_v39  ;;  %938 = vrot.lane.b32.xlu1 %v937_v57, %s1638_s19  ;;  %v907_v45 = vpack.c.bf16 %v849_v41, %v849_v41  ;;  %v1374_v41 = vld [vmem:[%s2007_s11] sm:$0xff]  ;;  %s1557_s19 = sshra.s32 %s1168_s23, 4  ;;  %s1558_s19 = int_to_ptr.hbm [resolvable:$true] %s1557_s19 }
 0x214   : > { %1136 = vmatpush.bf16.msra.mxu3 %v1374_v41  ;;  %v1465_v57 = vld [vmem:[%s2006_s10] ss:$0 sm:$0xff]  ;;  %s1559_s15 = scalar_lea.hbm %s1558_s19, 8  ;;  %p1564_p5 = scmp.lt.s32.totalorder %s1558_s19, %s2009_s13 }
 0x215   : > { %v844_v43 = vmul.f32 %v1462_v63, %v838_v42  ;;  %v915_v48 = vunpack.c.l.b16 %v907_v45  ;;  %v532_v63 = vsel %vm503_vm0, %v525_v59, 0.0  ;;  %v1466_v45 = vld [vmem:[%s2008_s12] ss:$0 sm:$0xff]  ;;  %p1560_p1 = scmp.ne.s32.totalorder %s1558_s19, %s1559_s15  ;;  %p1565_p6 = scmp.lt.s32.totalorder %s1563_s14, %s1559_s15 }
 0x216   : > { %533 = vadd.xlane.f32.xlu2 %v532_v63  ;;  %1099 = vmatpush.bf16.msra.mxu2 %v1366_v13 }
 0x217   : > { %v850_v44 = vadd.f32 %v1463_v52, %v844_v43  ;;  %p1561_p2 = pnand %p1560_p1, %p1749_p4  ;;  %p1566_p7 = por %p1565_p6, %p1564_p5 }
 0x219   : > { %v908_v47 = vpack.c.bf16 %v850_v44, %v850_v44  ;;  %p1562_p3 = pneg %p1561_p2 }
 0x21b   : > { %v916_v50 = vunpack.c.l.b16 %v908_v47  ;;  %p1567_p9 = pnand %p1566_p7, %p1562_p3 }
 0x21d   : > { %v917_v53 = vpack.c.b16 %v916_v50, %v915_v48 }
 0x21f   : > { %v942_v4 = vsel %vm503_vm0, %v917_v53, %v931_v3 }
 0x271   : > { %v512_v15 = vpop.xlane.xlu2 %511 }
 0x272   : > { %v522_v6 = vmul.f32 %v1810_v14, %v512_v15 }
 0x274   : > { %v540_v16 = vmul.f32 %v522_v6, %v522_v6  ;;  %v549_v31 = vsub.f32 %v1903_v62, %v522_v6 }
 0x285   : > { %v939_v5 = vpop.permute.xlu1 %938 }
 0x286   : > { %v945_v7 = vsel %vm943_vm4, %v942_v4, %v939_v5 }
 0x287   : > { %v962_v52 = vshrl.u32 %v945_v7, 16  ;;  %v965_v8 = vshll.u32 %v945_v7, 16 }
 0x289   : > { %v964_v9 = vrot.slane %v962_v52, 2  ;;  %v967_v10 = vrot.slane %v965_v8, 3  ;;  %v534_v17 = vpop.xlane.xlu2 %533 }
 0x28a   : > { %v537_v18 = vmul.f32 %v534_v17, %v1810_v14 }
 0x28b   : > { %v968_v11 = vor.u32 %v967_v10, %v964_v9 }
 0x28c   : > { %v543_v19 = vsub.f32 %v537_v18, %v540_v16 }
 0x28d   : > { %1312 = vmatmul.msk.bf16.vlgmr.msra.gmra.mxu1 %vm1005_vm5, %v968_v11 }
 0x28e   : > { %v546_v21 = vmax.f32 %v543_v19, 0.0 }
 0x290   : > { %v552_v22 = vadd.f32 1e-06, %v546_v21 }
 0x292   : > { %1481 = vrsqrt.f32 %v552_v22  ;;  %vm579_vm6 = vweird.f32 %v552_v22 }
 0x298   : > { %v1482_v24 = vpop.eup %1481 }
 0x299   : > { %v574_v27 = vmul.f32 %v1482_v24, %v552_v22  ;;  %vm580_vm7 = vweird.f32 %v1482_v24 }
 0x29a   : > { %vm581_vm8 = vmor %vm579_vm6, %vm580_vm7 }
 0x29b   : > { %v575_v25 = vmul.f32 %v1482_v24, %v574_v27 }
 0x29d   : > { %v576_v14 = vmul.f32 0.5, %v575_v25 }
 0x29f   : > { %v577_v30 = vsub.f32 1.5, %v576_v14 }
 0x2a1   : > { %v578_v33 = vmul.f32 %v1482_v24, %v577_v30 }
 0x2a3   : > { %v582_v35 = vsel %vm581_vm8, %v1482_v24, %v578_v33 }
 0x2a4   : > { %v585_v36 = vmul.f32 %v582_v35, %v549_v31 }
 0x2a6   : > { %v592_v37 = vmul.f32 %v1822_v46, %v585_v36 }
 0x2a8   : > { %v599_v38 = vadd.f32 %v1829_v51, %v592_v37 }
 0x2aa   : > { %v601_v39 = vpack.c.bf16 %v599_v38, %v599_v38 }
 0x2ac   : > { %1287 = vmatmul.msk.bf16.gmra.mxu0 %vm503_vm0, %v601_v39 }
 0x30a   : > { %v1018_v26 = vpop.f32.mrf.mxu1 }
 0x30b   : > { %v1019_v49 = vadd.f32 %v1464_v23, %v1018_v26 }
 0x30d   : > { %v1022_v28 = vmax.f32 %v1019_v49, 0.0 }
 0x30f   : > { %v1023_v29 = vpack.c.bf16 %v1022_v28, %v1022_v28 }
 0x311   : > { %1100 = vmatmul.bf16.vlgmr.msra.gmra.mxu2 %v1023_v29 }
 0x312   : > { %v1020_v32 = vpop.f32.mrf.mxu1 }
 0x329   : > { %v642_v46 = vpop.f32.mrf.mxu0 }
 0x331   : > { %v644_v51 = vpop.f32.mrf.mxu0 }
 0x394   : > { %v1101_v34 = vpop.f32.mrf.mxu2 }
 0x395   : > { %v1102_v42 = vadd.f32 %v1465_v57, %v1101_v34 }
 0x397   : > { %v1105_v43 = vpack.c.bf16 %v1102_v42, %v1102_v42 }
 0x399   : > { %1353 = vmatmul.msk.bf16.vlgmr.msra.gmra.mxu3 %vm503_vm0, %v1105_v43 }
 0x39c   : > { %v1103_v44 = vpop.f32.mrf.mxu2 }
 0x41c   : > { %v1138_v47 = vpop.f32.mrf.mxu3 }
 0x41d   : > { %v1139_v48 = vadd.f32 %v1466_v45, %v1138_v47 }
 0x41f   : > { %v1149_v50 = vadd.f32 %v1835_v60, %v1139_v48 }
 0x421   : > { %1150 = vst.msk [vmem:[%s489_s20] sm:$0xff] %vm503_vm0, %v1149_v50 }
 0x422   : > { %1570 = shalt.err (!%p1567_p9)
}
 0x423   : > { %1385 = dma.vmem_to_hbm [thread:$0]  (%p1749_p4), %s1166_s22, 128, %s1168_s23, %s1152_s28  }
 0x424   : > { %v1140_v60 = vpop.f32.mrf.mxu3 }
 0x425 PF: > { %p1402_p10 = scmp.ge.s32.totalorder %s1629_s30, 2  ;;  %s1179_s16 = sand.u32 1, %s1609_s25  }
 0x426   : > { %s1180_s20 = scalar_lea.sflag [#allocation4], %s1179_s16 }
 0x427   : > { %p1395_p11 = pnand %p1402_p10, %p1756_p8 }
 0x429   : > { %p1396_p12 = pneg %p1395_p11 }
 0x42b   : > { %1604 = dma.done.wait (%p1396_p12), %s1180_s20, 128  }
 0x42c   : > { %1606 = vsyncadd (%p1396_p12), %s1180_s20, 4294967168  ;;  %s28_s30 = sadd.s32 1, %s1629_s30   ;;  %s2024_s19 = sld [smem:[#allocation11_spill]] }
 0x42d   : > { %p25_p13 = scmp.ge.s32.totalorder %s28_s30, 4   ;;  %s2025_s27 = sld [smem:[#allocation15_spill]] }
 0x42e   : > { %s2026_s28 = sld [smem:[#allocation12_spill]]  ;;  %s2028_s25 = smov %s1613_s26 }
 0x42f   : > { %s2027_s29 = sld [smem:[#allocation13_spill]]  ;;  %27 = sbr.rel (!%p25_p13) target bundleno = 6 (0x6), region = 116 }
 0x432   : > { %s2029_s26 = smov %s2024_s19 }
 0x434   :  { %1186 = vsyncpa [#allocation3], 1 }
 0x435   :  { %1188 = vsyncpa [#allocation3 + $0x1], 1 }
 0x436   :  { %1189 = vsyncpa [#allocation6], 1 }
 0x437   :  { %1190 = vsyncpa [#allocation4], 1 }
 0x438   :  { %1192 = vsyncpa [#allocation4 + $0x1], 1 }

</bundles_post_ra>
